<compile_context>
chip_gen: v5e
topology: v5e:2x2
jax: 0.10.0
libtpu: 0.0.40
codegen_flags: <defaults>
</compile_context>

<pallas_src>
import jax
import jax.numpy as jnp
from jax.experimental import pallas as pl
from jax.experimental.pallas import tpu as pltpu

GEM_P = 3.0      # GeM default p (nn.Parameter initialised to 3.0)
GEM_EPS = 1e-6   # GeM clamp eps
L2_EPS = 1e-12   # F.normalize eps


def geo_head_kernel(x_ref, w_ref, b_ref, o_ref):
    """Aggregation head for one batch tile, resident in VMEM.

    x_ref: (TB, HW, C) feature-map tile (channels last), f32 or bf16
    w_ref: (C, F)      Linear weight, pre-transposed (f32 or bf16)
    b_ref: (1, F)      Linear bias (f32)
    o_ref: (TB, F)     output descriptor tile (f32)
    """
    x = x_ref[...]
    xf = x.astype(jnp.float32)                                  # (TB, HW, C)

    # --- L2Norm over channels (PyTorch dim=1 of NCHW == last dim here) ---
    # x / max(||x||, eps) == x * rsqrt(max(||x||^2, eps^2)); sum-of-squares in f32.
    sq = jnp.sum(xf * xf, axis=-1, keepdims=True)               # (TB, HW, 1)
    inv = jax.lax.rsqrt(jnp.maximum(sq, L2_EPS * L2_EPS))

    # Elementwise cube runs in the input dtype: bf16 input -> bf16 VALU (2x packed
    # throughput, half the intermediate VMEM); f32 input keeps full precision.
    cdt = x_ref.dtype
    xn = (xf * inv).astype(cdt)

    # --- GeM pooling over spatial: (mean(clamp(x,eps)^3))^(1/3) ---
    xc = jnp.maximum(xn, GEM_EPS)
    cube = xc * xc * xc                                         # p=3 as two VPU muls
    hw = cube.shape[1]
    # spatial mean as a sublane reduce (XLU slot, f32 accumulation); keeps the MXU
    # free and avoids the old M=1 batched matmul with ~1/256 MXU utilization.
    g = jnp.sum(cube, axis=1, dtype=jnp.float32) * (1.0 / hw)   # (TB, C)
    g = g ** (1.0 / GEM_P)                                      # tiny tensor; pow OK

    # --- GRL(0.3): identity in forward.  Flatten: already (TB, C). ---

    # --- Linear(features_dim -> fc_output_dim) on the MXU, f32 accumulation ---
    y = jnp.dot(g.astype(w_ref.dtype), w_ref[...],
                preferred_element_type=jnp.float32)
    y = y + b_ref[...].astype(jnp.float32)                      # (TB, F)

    # --- final L2Norm over the descriptor dim ---
    sq2 = jnp.sum(y * y, axis=-1, keepdims=True)
    y = y * jax.lax.rsqrt(jnp.maximum(sq2, L2_EPS * L2_EPS))

    o_ref[...] = y.astype(o_ref.dtype)


def _choose_batch_tile(B, HW, C, in_itemsize,
                       vmem_budget_bytes=12 << 20, target_grid_steps=4):
    """Batch tile sized against TOTAL per-tile VMEM (input double-buffer + f32
    upcast + cube intermediates), capped so the grid keeps >= ~4 steps when the
    batch allows (v7x megacore + DMA/compute overlap).  Caller pads B to a
    multiple of the returned tile, so no 'whole-B' fallback can blow VMEM."""
    comp = 2 if in_itemsize == 2 else 4   # xn/xc/cube follow the input dtype
    # per-element bytes resident per batch row:
    #   2*in_itemsize : double-buffered input block
    #   4             : f32 upcast for sum-of-squares / normalize
    #   2*comp        : xn/xc + cube in the compute dtype
    #   4             : f32 widen of cube for the GeM reduce (worst case)
    per_row = HW * C * (2 * in_itemsize + 4 + 2 * comp + 4)
    cap = max(1, vmem_budget_bytes // per_row)
    cap = min(cap, max(1, pl.cdiv(B, target_grid_steps)))
    if B <= 8 or cap >= B:
        return B                          # single block: block dims == full dims
    cap = max(8, cap - cap % 8)           # output block needs a multiple of 8
    for tb in range(cap, 7, -8):          # prefer a tile that divides B (no pad)
        if B % tb == 0:
            return tb
    return cap                            # caller pads B up to a multiple of this


def prepare_linear_params(weight, bias, param_dtype=jnp.bfloat16):
    """Hoisted out of the per-call path: transpose Linear weight once to (C, F)
    and cast to the MXU-native dtype (bf16 by default); bias stays f32."""
    return jnp.transpose(weight).astype(param_dtype), bias.reshape(1, -1).astype(jnp.float32)


def geo_localization_head(feat_bhwc, w_t, b2):
    """feat_bhwc: (B, HW, C) channels-last backbone features (f32 or bf16),
    w_t: (C, F) pre-transposed Linear weight, b2: (1, F) bias."""
    B, HW, C = feat_bhwc.shape
    F = w_t.shape[1]

    TB = _choose_batch_tile(B, HW, C, feat_bhwc.dtype.itemsize)
    Bp = pl.cdiv(B, TB) * TB
    if Bp != B:
        # zero-pad the batch to a multiple of the tile; pad rows are harmless
        # (L2Norm of 0 -> 0, GeM clamp -> eps, final L2Norm bounded) and sliced off.
        feat_bhwc = jnp.pad(feat_bhwc, ((0, Bp - B), (0, 0), (0, 0)))
    grid = (Bp // TB,)

    out = pl.pallas_call(
        geo_head_kernel,
        out_shape=jax.ShapeDtypeStruct((Bp, F), jnp.float32),
        grid=grid,
        in_specs=[
            pl.BlockSpec((TB, HW, C), lambda i: (i, 0, 0)),
            pl.BlockSpec((C, F), lambda i: (0, 0)),   # constant index -> stays resident
            pl.BlockSpec((1, F), lambda i: (0, 0)),
        ],
        out_specs=pl.BlockSpec((TB, F), lambda i: (i, 0)),
        compiler_params=pltpu.CompilerParams(
            dimension_semantics=("parallel",),        # shard batch tiles across TCs
            vmem_limit_bytes=32 * 1024 * 1024,        # explicit: > v5e's 16 MiB default,
        ),                                            # well under v7x's 64 MiB physical
    )(feat_bhwc, w_t, b2)

    return out[:B] if Bp != B else out


def _reference(feat_nchw, weight, bias):
    """Pure-JAX replica of the PyTorch aggregation forward, for verification."""
    x = feat_nchw.astype(jnp.float32)                           # (B, C, H, W)
    n = jnp.sqrt(jnp.sum(x * x, axis=1, keepdims=True))
    x = x / jnp.maximum(n, L2_EPS)                              # L2Norm dim=1
    g = jnp.mean(jnp.maximum(x, GEM_EPS) ** GEM_P, axis=(2, 3)) ** (1.0 / GEM_P)
    y = g @ weight.T + bias                                     # Linear (GRL fwd = id)
    n2 = jnp.sqrt(jnp.sum(y * y, axis=1, keepdims=True))
    return y / jnp.maximum(n2, L2_EPS)                          # L2Norm dim=1


if __name__ == "__main__":
    key = jax.random.PRNGKey(0)
    k1, k2, k3, k4 = jax.random.split(key, 4)

    # Shapes consistent with the module: resnet18 features_dim=512, 8x8 spatial
    # feature map, fc_output_dim=128.
    C, H, W, F = 512, 8, 8, 128
    bound = 1.0 / (C ** 0.5)
    weight = jax.random.uniform(k2, (F, C), minval=-bound, maxval=bound, dtype=jnp.float32)
    bias = jax.random.uniform(k3, (F,), minval=-bound, maxval=bound, dtype=jnp.float32)

    # --- path 1: f32 feature map + f32 params (tight numerical check) ---
    B = 2
    feat = jax.random.normal(k1, (B, C, H, W), dtype=jnp.float32)
    x_bhwc = jnp.transpose(feat, (0, 2, 3, 1)).reshape(B, H * W, C)
    w_f32, b_f32 = prepare_linear_params(weight, bias, param_dtype=jnp.float32)
    out = jax.block_until_ready(geo_localization_head(x_bhwc, w_f32, b_f32))
    ref = _reference(feat, weight, bias)
    assert out.shape == (B, F)
    err = float(jnp.max(jnp.abs(out - ref)))
    assert err < 1e-4, err

    # --- path 2: bf16 feature map + bf16 weight (production / mem-bound path),
    #             batch chosen to exercise padding and a multi-step grid ---
    B2 = 10
    feat2 = jax.random.normal(k4, (B2, C, H, W), dtype=jnp.float32)
    x2 = jnp.transpose(feat2, (0, 2, 3, 1)).reshape(B2, H * W, C).astype(jnp.bfloat16)
    w_bf, b_bf = prepare_linear_params(weight, bias, param_dtype=jnp.bfloat16)
    out2 = jax.block_until_ready(geo_localization_head(x2, w_bf, b_bf))
    ref2 = _reference(feat2, weight, bias)
    assert out2.shape == (B2, F)
    err2 = float(jnp.max(jnp.abs(out2 - ref2)))
    assert err2 < 2e-2, err2

    print("KERNEL_OK")
</pallas_src>

<mosaic_0001>
module attributes {stable_mosaic.version = 11 : i64} {
  func.func @geo_head_kernel(%arg0: i32, %arg1: memref<2x64x512xf32, #tpu.memory_space<vmem>>, %arg2: memref<512x128xf32, #tpu.memory_space<vmem>>, %arg3: memref<1x128xf32, #tpu.memory_space<vmem>>, %arg4: memref<2x128xf32, #tpu.memory_space<vmem>>) attributes {dimension_semantics = [#tpu.dimension_semantics<parallel>], iteration_bounds = array<i64: 1>, scalar_prefetch = 0 : i64, scratch_operands = 0 : i64, tpu.core_type = #tpu.core_type<tc>, window_params = [{transform_indices = @transform_0, window_bounds = array<i64: 2, 64, 512>}, {pipeline_mode = #tpu.pipeline_mode<synchronous>, transform_indices = @transform_1, window_bounds = array<i64: 512, 128>}, {pipeline_mode = #tpu.pipeline_mode<synchronous>, transform_indices = @transform_2, window_bounds = array<i64: 1, 128>}, {transform_indices = @transform_3, window_bounds = array<i64: 2, 128>}]} {
    %c0 = arith.constant 0 : index
    %c0_0 = arith.constant 0 : index
    %c0_1 = arith.constant 0 : index
    %0 = vector.load %arg1[%c0, %c0_0, %c0_1] : memref<2x64x512xf32, #tpu.memory_space<vmem>>, vector<2x64x512xf32>
    %1 = arith.mulf %0, %0 : vector<2x64x512xf32>
    %cst = arith.constant dense<0.000000e+00> : vector<2x64xf32>
    %2 = vector.multi_reduction <add>, %1, %cst [2] : vector<2x64x512xf32> to vector<2x64xf32>
    %3 = vector.shape_cast %2 : vector<2x64xf32> to vector<2x64x1xf32>
    %cst_2 = arith.constant 1.000000e-24 : f32
    %4 = vector.broadcast %cst_2 : f32 to vector<2x64x1xf32>
    %5 = arith.maximumf %3, %4 : vector<2x64x1xf32>
    %6 = math.rsqrt %5 : vector<2x64x1xf32>
    %7 = vector.broadcast %6 : vector<2x64x1xf32> to vector<2x64x512xf32>
    %8 = arith.mulf %0, %7 : vector<2x64x512xf32>
    %cst_3 = arith.constant 9.99999997E-7 : f32
    %9 = vector.broadcast %cst_3 : f32 to vector<2x64x512xf32>
    %10 = arith.maximumf %8, %9 : vector<2x64x512xf32>
    %11 = arith.mulf %10, %10 : vector<2x64x512xf32>
    %12 = arith.mulf %11, %10 : vector<2x64x512xf32>
    %cst_4 = arith.constant dense<0.000000e+00> : vector<2x512xf32>
    %13 = vector.multi_reduction <add>, %12, %cst_4 [1] : vector<2x64x512xf32> to vector<2x512xf32>
    %cst_5 = arith.constant 1.562500e-02 : f32
    %14 = vector.broadcast %cst_5 : f32 to vector<2x512xf32>
    %15 = arith.mulf %13, %14 : vector<2x512xf32>
    %cst_6 = arith.constant 0.333333343 : f32
    %16 = vector.broadcast %cst_6 : f32 to vector<2x512xf32>
    %17 = math.powf %15, %16 : vector<2x512xf32>
    %c0_7 = arith.constant 0 : index
    %c0_8 = arith.constant 0 : index
    %18 = vector.load %arg2[%c0_7, %c0_8] : memref<512x128xf32, #tpu.memory_space<vmem>>, vector<512x128xf32>
    %cst_9 = arith.constant dense<0.000000e+00> : vector<2x128xf32>
    %19 = tpu.matmul %17, %18, %cst_9 {dimension_numbers = #tpu.dot_dimension_numbers<[1], [0], [0], [1], [0, 0, 1, 1], [], []>} : vector<2x512xf32>, vector<512x128xf32>, vector<2x128xf32> -> vector<2x128xf32>
    %c0_10 = arith.constant 0 : index
    %c0_11 = arith.constant 0 : index
    %20 = vector.load %arg3[%c0_10, %c0_11] : memref<1x128xf32, #tpu.memory_space<vmem>>, vector<1x128xf32>
    %21 = vector.broadcast %20 : vector<1x128xf32> to vector<2x128xf32>
    %22 = arith.addf %19, %21 : vector<2x128xf32>
    %23 = arith.mulf %22, %22 : vector<2x128xf32>
    %cst_12 = arith.constant dense<0.000000e+00> : vector<2xf32>
    %24 = vector.multi_reduction <add>, %23, %cst_12 [1] : vector<2x128xf32> to vector<2xf32>
    %25 = vector.shape_cast %24 : vector<2xf32> to vector<2x1xf32>
    %cst_13 = arith.constant 1.000000e-24 : f32
    %26 = vector.broadcast %cst_13 : f32 to vector<2x1xf32>
    %27 = arith.maximumf %25, %26 : vector<2x1xf32>
    %28 = math.rsqrt %27 : vector<2x1xf32>
    %29 = vector.broadcast %28 : vector<2x1xf32> to vector<2x128xf32>
    %30 = arith.mulf %22, %29 : vector<2x128xf32>
    %c0_14 = arith.constant 0 : index
    %c0_15 = arith.constant 0 : index
    %31 = vector.load %arg4[%c0_14, %c0_15] : memref<2x128xf32, #tpu.memory_space<vmem>>, vector<2x128xf32>
    tpu.vector_store %arg4[%c0_14, %c0_15], %30 {strides = array<i32>} : memref<2x128xf32, #tpu.memory_space<vmem>>, vector<2x128xf32>,
    return
  }
  func.func @transform_0(%arg0: i32) -> (i32, i32, i32) {
    %c0_i32 = arith.constant 0 : i32
    %c0_i32_0 = arith.constant 0 : i32
    %c0_i32_1 = arith.constant 0 : i32
    return %arg0, %c0_i32, %c0_i32_0 : i32, i32, i32
  }
  func.func @transform_1(%arg0: i32) -> (i32, i32) {
    %c0_i32 = arith.constant 0 : i32
    %c0_i32_0 = arith.constant 0 : i32
    %c0_i32_1 = arith.constant 0 : i32
    return %c0_i32, %c0_i32_0 : i32, i32
  }
  func.func @transform_2(%arg0: i32) -> (i32, i32) {
    %c0_i32 = arith.constant 0 : i32
    %c0_i32_0 = arith.constant 0 : i32
    %c0_i32_1 = arith.constant 0 : i32
    return %c0_i32, %c0_i32_0 : i32, i32
  }
  func.func @transform_3(%arg0: i32) -> (i32, i32) {
    %c0_i32 = arith.constant 0 : i32
    %c0_i32_0 = arith.constant 0 : i32
    return %arg0, %c0_i32 : i32, i32
  }
}

</mosaic_0001>

<bundles_post_ra>
// kernel: tpu_custom_call.1
= control target key start
LH: loop header
LB: loop body
LE: loop exit
PB: predicated region body
PF: predicated region fallthrough
CT: control target
= control target key end

     0   :  { %8 = vsyncpa [#allocation3], 0  ;;  %s2225_s0 = inlined_call_operand.hbm [shape: f32[2,64,512], index: 0, kind: input, shape index: {}]   ;;  %s2226_s1 = inlined_call_operand.hbm [shape: f32[512,128], index: 1, kind: input, shape index: {}]   ;;  %s2227_s2 = inlined_call_operand.vmem [shape: f32[1,128], index: 2, kind: input, shape index: {}]   ;;  %s2228_s3 = inlined_call_operand.hbm [shape: f32[2,128], index: 3, kind: output, shape index: {}]  }
   0x1   :  { %9 = vsyncpa [#allocation6], 0 }
   0x2   :  { %10 = vsyncpa [#allocation4], 0  ;;  %s15_s14 = sshll.u32 %s2225_s0, 4  ;;  %s1356_s15 = smov [#allocation2]   ;;  %s16_s14 = int_to_ptr.hbm [resolvable:$true] %s15_s14 }
   0x3   :  { %s17_s16 = sshll.u32 %s1356_s15, 4  ;;  %s28_s19 = sshll.u32 %s2226_s1, 4  ;;  %s18_s16 = int_to_ptr.vmem [resolvable:$true] %s17_s16  ;;  %s29_s19 = int_to_ptr.hbm [resolvable:$true] %s28_s19 }
   0x4   :  { %s1357_s20 = smov 512   ;;  %s1358_s21 = smov 32  }
   0x5   :  { %23 = dma.hbm_to_vmem [thread:$0]  %s16_s14, 8192, %s18_s16, [#allocation3], %s1357_s20, %s1357_s20, %s1358_s21  }
   0x6   :  { %s1359_s22 = smov [#allocation5]   ;;  %s1360_s24 = smov 128  }
   0x7   :  { %s30_s23 = sshll.u32 %s1359_s22, 4  ;;  %s1361_s25 = smov 8   ;;  %s31_s23 = int_to_ptr.vmem [resolvable:$true] %s30_s23 }
   0x8   :  { %36 = dma.hbm_to_vmem [thread:$0]  %s29_s19, 8192, %s31_s23, [#allocation6], %s1360_s24, %s1360_s24, %s1361_s25  }
   0x9   :  { %1350 = dma.done.wait [#allocation3], 8192  }
   0xa   :  { %1351 = vsyncadd [#allocation3], 4294959104 }
   0xb   :  { %1352 = dma.done.wait [#allocation6], 8192  }
   0xc   :  { %1353 = vsyncadd [#allocation6], 4294959104  ;;  %v1389_v0 = vld [vmem:[#allocation2 + $0x100] sm:$0xff]  ;;  %v1391_v1 = vld [vmem:[#allocation2 + $0x108] sm:$0xff]  ;;  %s997_s29 = sshll.u32 %s2228_s3, 4  ;;  %s998_s29 = int_to_ptr.hbm [resolvable:$true] %s997_s29 }
   0xd   :  { %v1393_v2 = vld [vmem:[#allocation2 + $0x110] sm:$0xff]  ;;  %v1395_v3 = vld [vmem:[#allocation2 + $0x118] sm:$0xff]  ;;  %v143_v4 = vmul.f32 %v1389_v0, %v1389_v0  ;;  %v144_v5 = vmul.f32 %v1391_v1, %v1391_v1  ;;  %v1403_v7 = vld [vmem:[#allocation2 + $0x40] sm:$0xff] }
   0xe   :  { %v145_v6 = vmul.f32 %v1393_v2, %v1393_v2  ;;  %v1405_v8 = vld [vmem:[#allocation2 + $0x48] sm:$0xff]  ;;  %v146_v9 = vmul.f32 %v1395_v3, %v1395_v3  ;;  %v1409_v10 = vld [vmem:[#allocation2 + $0x50] sm:$0xff]  ;;  %v1411_v11 = vld [vmem:[#allocation2 + $0x58] sm:$0xff]  ;;  %v119_v12 = vmul.f32 %v1403_v7, %v1403_v7 }
   0xf   :  { %v120_v13 = vmul.f32 %v1405_v8, %v1405_v8  ;;  %v1417_v14 = vld [vmem:[#allocation2] sm:$0xff]  ;;  %v215_v15 = vadd.f32 %v144_v5, %v143_v4  ;;  %v121_v16 = vmul.f32 %v1409_v10, %v1409_v10  ;;  %v122_v17 = vmul.f32 %v1411_v11, %v1411_v11  ;;  %v1423_v18 = vld [vmem:[#allocation2 + $0x8] sm:$0xff]  ;;  %v1425_v19 = vld [vmem:[#allocation2 + $0x10] sm:$0xff] }
  0x10   :  { %v1427_v20 = vld [vmem:[#allocation2 + $0x18] sm:$0xff]  ;;  %v111_v21 = vmul.f32 %v1417_v14, %v1417_v14  ;;  %v112_v23 = vmul.f32 %v1423_v18, %v1423_v18  ;;  %v113_v24 = vmul.f32 %v1425_v19, %v1425_v19  ;;  %v1437_v26 = vld [vmem:[#allocation2 + $0x120] sm:$0xff]  ;;  %v1439_v27 = vld [vmem:[#allocation2 + $0x128] sm:$0xff] }
  0x11   :  { %v185_v22 = vadd.f32 %v120_v13, %v119_v12  ;;  %v114_v25 = vmul.f32 %v1427_v20, %v1427_v20  ;;  %v1441_v28 = vld [vmem:[#allocation2 + $0x130] sm:$0xff]  ;;  %v216_v29 = vadd.f32 %v215_v15, %v145_v6  ;;  %v1443_v30 = vld [vmem:[#allocation2 + $0x138] sm:$0xff]  ;;  %v147_v31 = vmul.f32 %v1437_v26, %v1437_v26  ;;  %v1451_v34 = vld [vmem:[#allocation2 + $0x140] sm:$0xff] }
  0x12   :  { %v148_v32 = vmul.f32 %v1439_v27, %v1439_v27  ;;  %v149_v33 = vmul.f32 %v1441_v28, %v1441_v28  ;;  %v1453_v35 = vld [vmem:[#allocation2 + $0x148] sm:$0xff]  ;;  %v175_v37 = vadd.f32 %v112_v23, %v111_v21  ;;  %v150_v38 = vmul.f32 %v1443_v30, %v1443_v30  ;;  %v1457_v39 = vld [vmem:[#allocation2 + $0x150] sm:$0xff]  ;;  %v1459_v40 = vld [vmem:[#allocation2 + $0x158] sm:$0xff] }
  0x13   :  { %v186_v36 = vadd.f32 %v185_v22, %v121_v16  ;;  %v151_v41 = vmul.f32 %v1451_v34, %v1451_v34  ;;  %v1463_v42 = vld [vmem:[#allocation2 + $0x20] sm:$0xff]  ;;  %v217_v43 = vadd.f32 %v216_v29, %v146_v9  ;;  %v152_v45 = vmul.f32 %v1453_v35, %v1453_v35  ;;  %v1469_v47 = vld [vmem:[#allocation2 + $0x28] sm:$0xff]  ;;  %v1471_v48 = vld [vmem:[#allocation2 + $0x30] sm:$0xff] }
  0x14   :  { %v220_v44 = vadd.f32 %v148_v32, %v147_v31  ;;  %v153_v46 = vmul.f32 %v1457_v39, %v1457_v39  ;;  %v176_v50 = vadd.f32 %v175_v37, %v113_v24  ;;  %v154_v51 = vmul.f32 %v1459_v40, %v1459_v40  ;;  %v1477_v53 = vld [vmem:[#allocation2 + $0x160] sm:$0xff]  ;;  %v1479_v54 = vld [vmem:[#allocation2 + $0x168] sm:$0xff]  ;;  %v1481_v57 = vld [vmem:[#allocation2 + $0x38] sm:$0xff] }
  0x15   :  { %v187_v49 = vadd.f32 %v186_v36, %v122_v17  ;;  %v115_v52 = vmul.f32 %v1463_v42, %v1463_v42  ;;  %218 = vadd.xlane.f32.xlu1 %v217_v43  ;;  %v225_v56 = vadd.f32 %v152_v45, %v151_v41  ;;  %v116_v58 = vmul.f32 %v1469_v47, %v1469_v47  ;;  %v1487_v60 = vld [vmem:[#allocation2 + $0x80] sm:$0xff]  ;;  %v1489_v61 = vld [vmem:[#allocation2 + $0x88] sm:$0xff]  ;;  %v1491_v63 = vld [vmem:[#allocation2 + $0x170] sm:$0xff] }
  0x16   :  { %v221_v55 = vadd.f32 %v220_v44, %v149_v33  ;;  %v117_v59 = vmul.f32 %v1471_v48, %v1471_v48  ;;  %v177_v62 = vadd.f32 %v176_v50, %v114_v25  ;;  %v155_v4 = vmul.f32 %v1477_v53, %v1477_v53  ;;  %v1497_v12 = vld [vmem:[#allocation2 + $0x90] sm:$0xff]  ;;  %v1499_v13 = vld [vmem:[#allocation2 + $0x60] sm:$0xff]  ;;  %v1501_v15 = vld [vmem:[#allocation2 + $0x68] sm:$0xff] }
  0x17   :  { %188 = vadd.xlane.f32.xlu2 %v187_v49  ;;  %v156_v5 = vmul.f32 %v1479_v54, %v1479_v54  ;;  %v226_v6 = vadd.f32 %v225_v56, %v153_v46  ;;  %v180_v9 = vadd.f32 %v116_v58, %v115_v52  ;;  %v118_v17 = vmul.f32 %v1481_v57, %v1481_v57  ;;  %v1511_v31 = vld [vmem:[#allocation2 + $0x70] sm:$0xff]  ;;  %v1513_v32 = vld [vmem:[#allocation2 + $0x178] sm:$0xff]  ;;  %v1521_v41 = vld [vmem:[#allocation2 + $0xa0] sm:$0xff] }
  0x18   :  { %178 = vadd.xlane.f32.xlu0 %v177_v62  ;;  %v222_v16 = vadd.f32 %v221_v55, %v150_v38  ;;  %v127_v21 = vmul.f32 %v1487_v60, %v1487_v60  ;;  %v128_v22 = vmul.f32 %v1489_v61, %v1489_v61  ;;  %v157_v25 = vmul.f32 %v1491_v63, %v1491_v63  ;;  %v1523_v43 = vld [vmem:[#allocation2 + $0xa8] sm:$0xff]  ;;  %v1525_v44 = vld [vmem:[#allocation2 + $0x98] sm:$0xff]  ;;  %v1527_v45 = vld [vmem:[#allocation2 + $0x1a0] sm:$0xff] }
  0x19   :  { %v227_v23 = vadd.f32 %v226_v6, %v154_v51  ;;  %v181_v24 = vadd.f32 %v180_v9, %v117_v59  ;;  %v230_v29 = vadd.f32 %v156_v5, %v155_v4  ;;  %v129_v33 = vmul.f32 %v1497_v12, %v1497_v12  ;;  %2251 = vst [vmem:[#allocation11_spill] sm:$0xff] %v1527_v45  ;;  %v1529_v46 = vld [vmem:[#allocation2 + $0x1a8] sm:$0xff]  ;;  %v1535_v56 = vld [vmem:[#allocation2 + $0x78] sm:$0xff]  ;;  %v1541_v62 = vld [vmem:[#allocation2 + $0x180] sm:$0xff] }
  0x1a   :  { %v195_v36 = vadd.f32 %v128_v22, %v127_v21  ;;  %v123_v37 = vmul.f32 %v1499_v13, %v1499_v13  ;;  %v124_v38 = vmul.f32 %v1501_v15, %v1501_v15  ;;  %2252 = vst [vmem:[#allocation12_spill] sm:$0xff] %v1529_v46  ;;  %v125_v50 = vmul.f32 %v1511_v31, %v1511_v31  ;;  %v1543_v4 = vld [vmem:[#allocation2 + $0x188] sm:$0xff]  ;;  %v1547_v9 = vld [vmem:[#allocation2 + $0xb0] sm:$0xff] }
  0x1b   :  { %v182_v49 = vadd.f32 %v181_v24, %v118_v17  ;;  %v158_v52 = vmul.f32 %v1513_v32, %v1513_v32  ;;  %v231_v55 = vadd.f32 %v230_v29, %v157_v25  ;;  %v131_v58 = vmul.f32 %v1521_v41, %v1521_v41  ;;  %2253 = vst [vmem:[#allocation13_spill] sm:$0xff] %v1541_v62  ;;  %v1553_v21 = vld [vmem:[#allocation2 + $0x1b0] sm:$0xff] }
  0x1c   :  { %v190_v51 = vadd.f32 %v124_v38, %v123_v37  ;;  %v132_v59 = vmul.f32 %v1523_v43, %v1523_v43  ;;  %2254 = vst [vmem:[#allocation14_spill] sm:$0xff] %v1543_v4  ;;  %v130_v5 = vmul.f32 %v1525_v44, %v1525_v44  ;;  %v196_v6 = vadd.f32 %v195_v36, %v129_v33  ;;  %v1563_v37 = vld [vmem:[#allocation2 + $0x190] sm:$0xff] }
  0x1d   :  { %223 = vadd.xlane.f32.xlu1 %v222_v16  ;;  %2255 = vst [vmem:[#allocation15_spill] sm:$0xff] %v1547_v9  ;;  %v163_v16 = vmul.f32 %v1527_v45, %v1527_v45  ;;  %v164_v17 = vmul.f32 %v1529_v46, %v1529_v46  ;;  %v126_v22 = vmul.f32 %v1535_v56, %v1535_v56  ;;  %v1565_v46 = vld [vmem:[#allocation2 + $0xb8] sm:$0xff] }
  0x1e   :  { %2256 = vst [vmem:[#allocation16_spill] sm:$0xff] %v1553_v21  ;;  %v191_v24 = vadd.f32 %v190_v51, %v125_v50  ;;  %v160_v25 = vmul.f32 %v1543_v4, %v1543_v4  ;;  %v232_v29 = vadd.f32 %v231_v55, %v158_v52  ;;  %v133_v33 = vmul.f32 %v1547_v9, %v1547_v9  ;;  %v1569_v51 = vld [vmem:[#allocation2 + $0x1c0] sm:$0xff]  ;;  %v1573_v45 = vld [vmem:[#allocation2 + $0x1b8] sm:$0xff]  ;;  %v1577_v55 = vld [vmem:[#allocation2 + $0xe8] sm:$0xff] }
  0x1f   :  { %228 = vadd.xlane.f32.xlu2 %v227_v23  ;;  %v159_v23 = vmul.f32 %v1541_v62, %v1541_v62  ;;  %v200_v36 = vadd.f32 %v132_v59, %v131_v58  ;;  %2257 = vst [vmem:[#allocation17_spill] sm:$0xff] %v1563_v37  ;;  %v197_v38 = vadd.f32 %v196_v6, %v130_v5  ;;  %v1571_v62 = vld [vmem:[#allocation2 + $0x1c8] sm:$0xff]  ;;  %v1575_v52 = vld [vmem:[#allocation2 + $0xe0] sm:$0xff] }
  0x20   :  { %183 = vadd.xlane.f32.xlu0 %v182_v49  ;;  %2258 = vst [vmem:[#allocation18_spill] sm:$0xff] %v1565_v46  ;;  %v165_v49 = vmul.f32 %v1553_v21, %v1553_v21  ;;  %v240_v50 = vadd.f32 %v164_v17, %v163_v16  ;;  %v192_v58 = vadd.f32 %v191_v24, %v126_v22  ;;  %v1583_v17 = vld [vmem:[#allocation2 + $0x198] sm:$0xff]  ;;  %v1589_v9 = vld [vmem:[#allocation2 + $0xc0] sm:$0xff]  ;;  %v1591_v22 = vld [vmem:[#allocation2 + $0xc8] sm:$0xff] }
  0x21   :  { %2259 = vst [vmem:[#allocation19_spill] sm:$0xff] %v1569_v51  ;;  %v161_v59 = vmul.f32 %v1563_v37, %v1563_v37  ;;  %v235_v5 = vadd.f32 %v160_v25, %v159_v23  ;;  %v134_v6 = vmul.f32 %v1565_v46, %v1565_v46  ;;  %v201_v16 = vadd.f32 %v200_v36, %v133_v33  ;;  %v1595_v25 = vld [vmem:[#allocation2 + $0x1d0] sm:$0xff]  ;;  %v1613_v46 = vld [vmem:[#allocation2 + $0x1d8] sm:$0xff] }
  0x22   :  { %2260 = vst [vmem:[#allocation20_spill] sm:$0xff] %v1571_v62  ;;  %v167_v4 = vmul.f32 %v1569_v51, %v1569_v51  ;;  %v168_v21 = vmul.f32 %v1571_v62, %v1571_v62  ;;  %v166_v24 = vmul.f32 %v1573_v45, %v1573_v45  ;;  %v241_v23 = vadd.f32 %v240_v50, %v165_v49  ;;  %v1601_v36 = vld [vmem:[#allocation2 + $0xf0] sm:$0xff] }
  0x23   :  { %2261 = vst [vmem:[#allocation21_spill] sm:$0xff] %v1573_v45  ;;  %v140_v33 = vmul.f32 %v1577_v55, %v1577_v55  ;;  %v162_v62 = vmul.f32 %v1583_v17, %v1583_v17  ;;  %v236_v51 = vadd.f32 %v235_v5, %v161_v59  ;;  %v136_v49 = vmul.f32 %v1591_v22, %v1591_v22  ;;  %v1611_v45 = vld [vmem:[#allocation2 + $0xd0] sm:$0xff]  ;;  %v1617_v5 = vld [vmem:[#allocation2 + $0xf8] sm:$0xff] }
  0x24   :  { %2262 = vst [vmem:[#allocation22_spill] sm:$0xff] %v1575_v52  ;;  %v202_v50 = vadd.f32 %v201_v16, %v134_v6  ;;  %v245_v37 = vadd.f32 %v168_v21, %v167_v4  ;;  %v170_v4 = vmul.f32 %v1613_v46, %v1613_v46  ;;  %v1623_v16 = vld [vmem:[#allocation2 + $0xd8] sm:$0xff] }
  0x25   :  { %2263 = vst [vmem:[#allocation23_spill] sm:$0xff] %v1577_v55  ;;  %233 = vadd.xlane.f32.xlu1 %v232_v29  ;;  %v139_v29 = vmul.f32 %v1575_v52, %v1575_v52  ;;  %v169_v52 = vmul.f32 %v1595_v25, %v1595_v25  ;;  %v242_v55 = vadd.f32 %v241_v23, %v166_v24  ;;  %v107_v24 = vld [vmem:[#allocation2 + $0x1e0] sm:$0xff]  ;;  %v108_v23 = vld [vmem:[#allocation2 + $0x1e8] sm:$0xff] }
  0x26   :  { %2264 = vst [vmem:[#allocation24_spill] sm:$0xff] %v1583_v17 }
  0x27   :  { %2265 = vst [vmem:[#allocation25_spill] sm:$0xff] %v1589_v9  ;;  %198 = vadd.xlane.f32.xlu2 %v197_v38  ;;  %v135_v38 = vmul.f32 %v1589_v9, %v1589_v9  ;;  %v210_v59 = vadd.f32 %v140_v33, %v139_v29  ;;  %v237_v9 = vadd.f32 %v236_v51, %v162_v62 }
  0x28   :  { %2266 = vst [vmem:[#allocation26_spill] sm:$0xff] %v1591_v22  ;;  %193 = vadd.xlane.f32.xlu0 %v192_v58  ;;  %v141_v58 = vmul.f32 %v1601_v36, %v1601_v36  ;;  %v137_v22 = vmul.f32 %v1611_v45, %v1611_v45  ;;  %v246_v21 = vadd.f32 %v245_v37, %v169_v52 }
  0x29   :  { %2267 = vst [vmem:[#allocation27_spill] sm:$0xff] %v1595_v25  ;;  %v205_v6 = vadd.f32 %v136_v49, %v135_v38  ;;  %v142_v29 = vmul.f32 %v1617_v5, %v1617_v5  ;;  %v138_v62 = vmul.f32 %v1623_v16, %v1623_v16  ;;  %v171_v38 = vmul.f32 %v107_v24, %v107_v24  ;;  %v110_v25 = vld [vmem:[#allocation2 + $0x1f8] sm:$0xff] }
  0x2a   :  { %2268 = vst [vmem:[#allocation28_spill] sm:$0xff] %v1601_v36  ;;  %v211_v33 = vadd.f32 %v210_v59, %v141_v58  ;;  %v172_v49 = vmul.f32 %v108_v23, %v108_v23 }
  0x2b   :  { %2269 = vst [vmem:[#allocation29_spill] sm:$0xff] %v1611_v45  ;;  %v206_v51 = vadd.f32 %v205_v6, %v137_v22  ;;  %v109_v45 = vld [vmem:[#allocation2 + $0x1f0] sm:$0xff] }
  0x2c   :  { %2270 = vst [vmem:[#allocation30_spill] sm:$0xff] %v1613_v46  ;;  %v212_v36 = vadd.f32 %v211_v33, %v142_v29  ;;  %v173_v52 = vmul.f32 %v109_v45, %v109_v45  ;;  %v250_v46 = vadd.f32 %v172_v49, %v171_v38 }
  0x2d   :  { %2271 = vst [vmem:[#allocation31_spill] sm:$0xff] %v1617_v5  ;;  %203 = vadd.xlane.f32.xlu1 %v202_v50  ;;  %v247_v50 = vadd.f32 %v246_v21, %v170_v4  ;;  %v207_v37 = vadd.f32 %v206_v51, %v138_v62 }
  0x2e   :  { %2272 = vst [vmem:[#allocation32_spill] sm:$0xff] %v1623_v16  ;;  %v251_v5 = vadd.f32 %v250_v46, %v173_v52 }
  0x2f   :  { %243 = vadd.xlane.f32.xlu2 %v242_v55  ;;  %v174_v55 = vmul.f32 %v110_v25, %v110_v25 }
  0x30   :  { %238 = vadd.xlane.f32.xlu0 %v237_v9 }
  0x31   :  { %v252_v58 = vadd.f32 %v251_v5, %v174_v55 }
  0x35   :  { %248 = vadd.xlane.f32.xlu1 %v247_v50 }
  0x37   :  { %213 = vadd.xlane.f32.xlu2 %v212_v36 }
  0x38   :  { %208 = vadd.xlane.f32.xlu0 %v207_v37 }
  0x40   :  { %253 = vadd.xlane.f32.xlu0 %v252_v58 }
  0x88   :  { %v219_v9 = vpop.xlane.xlu1 %218 }
  0x89   :  { %v263_v59 = vmax.f32 %v219_v9, 1e-24 }
  0x8a   :  { %v189_v16 = vpop.xlane.xlu2 %188 }
  0x8b   :  { %v257_v22 = vmax.f32 %v189_v16, 1e-24  ;;  %1208 = vrsqrt.f32 %v263_v59  ;;  %v179_v6 = vpop.xlane.xlu0 %178  ;;  %vm357_vm0 = vweird.f32 %v263_v59 }
  0x8c   :  { %v255_v4 = vmax.f32 %v179_v6, 1e-24 }
  0x8d   :  { %1210 = vrsqrt.f32 %v257_v22  ;;  %vm297_vm3 = vweird.f32 %v257_v22 }
  0x8e   :  { %1212 = vrsqrt.f32 %v255_v4  ;;  %vm277_vm7 = vweird.f32 %v255_v4 }
  0x90   :  { %v224_v21 = vpop.xlane.xlu1 %223 }
  0x91   :  { %v1209_v45 = vpop.eup %1208  ;;  %v1629_v24 = vmax.f32 %v224_v21, 1e-24 }
  0x92   :  { %v229_v23 = vpop.xlane.xlu2 %228  ;;  %v352_v29 = vmul.f32 %v1209_v45, %v263_v59  ;;  %vm358_vm1 = vweird.f32 %v1209_v45 }
  0x93   :  { %v1211_v36 = vpop.eup %1210  ;;  %v1631_v25 = vmax.f32 %v229_v23, 1e-24  ;;  %1214 = vrsqrt.f32 %v1629_v24  ;;  %vm359_vm2 = vmor %vm357_vm0, %vm358_vm1  ;;  %v184_v23 = vpop.xlane.xlu0 %183  ;;  %vm367_vm8 = vweird.f32 %v1629_v24 }
  0x94   :  { %v292_v46 = vmul.f32 %v1211_v36, %v257_v22  ;;  %v1213_v5 = vpop.eup %1212  ;;  %v353_v33 = vmul.f32 %v1209_v45, %v352_v29  ;;  %vm298_vm4 = vweird.f32 %v1211_v36 }
  0x95   :  { %v272_v62 = vmul.f32 %v1213_v5, %v255_v4  ;;  %1216 = vrsqrt.f32 %v1631_v25  ;;  %vm299_vm5 = vmor %vm297_vm3, %vm298_vm4  ;;  %vm278_vm6 = vweird.f32 %v1213_v5  ;;  %vm377_vm11 = vweird.f32 %v1631_v25 }
  0x96   :  { %v293_v16 = vmul.f32 %v1211_v36, %v292_v46  ;;  %v354_v51 = vmul.f32 0.5, %v353_v33  ;;  %vm279_vm10 = vmor %vm277_vm7, %vm278_vm6 }
  0x97   :  { %v273_v49 = vmul.f32 %v1213_v5, %v272_v62 }
  0x98   :  { %v294_v38 = vmul.f32 0.5, %v293_v16  ;;  %v355_v50 = vsub.f32 1.5, %v354_v51 }
  0x99   :  { %v1635_v37 = vpop.eup %1214  ;;  %v274_v55 = vmul.f32 0.5, %v273_v49  ;;  %v234_v49 = vpop.xlane.xlu1 %233 }
  0x9a   :  { %v295_v52 = vsub.f32 1.5, %v294_v38  ;;  %v356_v58 = vmul.f32 %v1209_v45, %v355_v50  ;;  %v362_v9 = vmul.f32 %v1635_v37, %v1629_v24  ;;  %v1647_v38 = vmax.f32 %v184_v23, 1e-24 }
  0x9b   :  { %v1639_v6 = vpop.eup %1216  ;;  %v275_v59 = vsub.f32 1.5, %v274_v55  ;;  %vm368_vm9 = vweird.f32 %v1635_v37 }
  0x9c   :  { %v360_v21 = vsel %vm359_vm2, %v1209_v45, %v356_v58  ;;  %v296_v46 = vmul.f32 %v1211_v36, %v295_v52  ;;  %v363_v33 = vmul.f32 %v1635_v37, %v362_v9  ;;  %v372_v16 = vmul.f32 %v1639_v6, %v1631_v25  ;;  %vm369_vm13 = vmor %vm367_vm8, %vm368_vm9 }
  0x9d   :  { %v463_v29 = vmul.f32 %v360_v21, %v1389_v0  ;;  %v464_v62 = vmul.f32 %v360_v21, %v1391_v1  ;;  %v465_v51 = vmul.f32 %v360_v21, %v1393_v2  ;;  %v466_v22 = vmul.f32 %v360_v21, %v1395_v3  ;;  %v199_v3 = vpop.xlane.xlu2 %198 }
  0x9e   :  { %v300_v0 = vsel %vm299_vm5, %v1211_v36, %v296_v46  ;;  %v276_v50 = vmul.f32 %v1213_v5, %v275_v59  ;;  %v364_v52 = vmul.f32 0.5, %v363_v33  ;;  %v373_v55 = vmul.f32 %v1639_v6, %v372_v16 }
  0x9f   :  { %v527_v45 = vmax.f32 %v463_v29, 1e-06  ;;  %v1652_v58 = vmax.f32 %v234_v49, 1e-24  ;;  %v528_v1 = vmax.f32 %v464_v62, 1e-06  ;;  %1218 = vrsqrt.f32 %v1647_v38 }
  0xa0   :  { %v529_v2 = vmax.f32 %v465_v51, 1e-06  ;;  %v530_v9 = vmax.f32 %v466_v22, 1e-06  ;;  %v439_v21 = vmul.f32 %v300_v0, %v1403_v7  ;;  %v440_v36 = vmul.f32 %v300_v0, %v1405_v8 }
  0xa1   :  { %v441_v4 = vmul.f32 %v300_v0, %v1409_v10  ;;  %v591_v23 = vmul.f32 %v527_v45, %v527_v45  ;;  %v442_v29 = vmul.f32 %v300_v0, %v1411_v11  ;;  %v280_v46 = vsel %vm279_vm10, %v1213_v5, %v276_v50 }
  0xa2   :  { %v365_v59 = vsub.f32 1.5, %v364_v52  ;;  %v374_v33 = vmul.f32 0.5, %v373_v55  ;;  %vm378_vm12 = vweird.f32 %v1639_v6  ;;  %1220 = vrsqrt.f32 %v1652_v58 }
  0xa3   :  { %v1664_v16 = vmax.f32 %v199_v3, 1e-24  ;;  %v592_v7 = vmul.f32 %v528_v1, %v528_v1  ;;  %v593_v8 = vmul.f32 %v529_v2, %v529_v2  ;;  %v431_v10 = vmul.f32 %v280_v46, %v1417_v14  ;;  %vm379_vm14 = vmor %vm377_vm11, %vm378_vm12 }
  0xa4   :  { %v366_v62 = vmul.f32 %v1635_v37, %v365_v59  ;;  %v594_v51 = vmul.f32 %v530_v9, %v530_v9  ;;  %v503_v49 = vmax.f32 %v439_v21, 1e-06  ;;  %v504_v11 = vmax.f32 %v440_v36, 1e-06 }
  0xa5   :  { %v432_v5 = vmul.f32 %v280_v46, %v1423_v18  ;;  %v1673_v22 = vpop.eup %1218  ;;  %v1675_v0 = vmul.f32 %v591_v23, %v527_v45  ;;  %v505_v50 = vmax.f32 %v441_v4, 1e-06  ;;  %v506_v52 = vmax.f32 %v442_v29, 1e-06 }
  0xa6   :  { %v370_v14 = vsel %vm369_vm13, %v1635_v37, %v366_v62  ;;  %v433_v55 = vmul.f32 %v280_v46, %v1425_v19  ;;  %v434_v3 = vmul.f32 %v280_v46, %v1427_v20  ;;  %v375_v18 = vsub.f32 1.5, %v374_v33 }
  0xa7   :  { %v467_v21 = vmul.f32 %v370_v14, %v1437_v26  ;;  %v1681_v36 = vmul.f32 %v592_v7, %v528_v1  ;;  %v495_v59 = vmax.f32 %v431_v10, 1e-06  ;;  %v468_v24 = vmul.f32 %v370_v14, %v1439_v27 }
  0xa8   :  { %v469_v17 = vmul.f32 %v370_v14, %v1441_v28  ;;  %v1685_v45 = vpop.eup %1220  ;;  %v1687_v4 = vmul.f32 %v593_v8, %v529_v2  ;;  %v567_v23 = vmul.f32 %v503_v49, %v503_v49  ;;  %v496_v37 = vmax.f32 %v432_v5, 1e-06 }
  0xa9   :  { %v282_v19 = vmul.f32 %v1673_v22, %v1647_v38  ;;  %v568_v20 = vmul.f32 %v504_v11, %v504_v11  ;;  %v569_v29 = vmul.f32 %v505_v50, %v505_v50  ;;  %v470_v26 = vmul.f32 %v370_v14, %v1443_v30 }
  0xaa   :  { %v531_v1 = vmax.f32 %v467_v21, 1e-06  ;;  %v570_v46 = vmul.f32 %v506_v52, %v506_v52  ;;  %v497_v33 = vmax.f32 %v433_v55, 1e-06  ;;  %v498_v7 = vmax.f32 %v434_v3, 1e-06 }
  0xab   :  { %v376_v27 = vmul.f32 %v1639_v6, %v375_v18  ;;  %v1693_v28 = vmul.f32 %v594_v51, %v530_v9  ;;  %v559_v10 = vmul.f32 %v495_v59, %v495_v59  ;;  %v532_v2 = vmax.f32 %v468_v24, 1e-06 }
  0xac   :  { %v533_v8 = vmax.f32 %v469_v17, 1e-06  ;;  %v1695_v62 = vmul.f32 %v567_v23, %v503_v49  ;;  %v560_v5 = vmul.f32 %v496_v37, %v496_v37  ;;  %v283_v30 = vmul.f32 %v1673_v22, %v282_v19 }
  0xad   :  { %vm287_vm15 = vweird.f32 %v1647_v38  ;;  %v382_v14 = vmul.f32 %v1685_v45, %v1652_v58  ;;  %vm387_vm0 = vweird.f32 %v1652_v58  ;;  %v1706_v9 = vmul.f32 %v568_v20, %v504_v11 }
  0xae   :  { %v534_v17 = vmax.f32 %v470_v26, 1e-06  ;;  %v595_v51 = vmul.f32 %v531_v1, %v531_v1  ;;  %v380_v49 = vsel %vm379_vm14, %v1639_v6, %v376_v27  ;;  %v1709_v55 = vmul.f32 %v569_v29, %v505_v50 }
  0xaf   :  { %v1711_v3 = vmul.f32 %v570_v46, %v506_v52  ;;  %v561_v25 = vmul.f32 %v497_v33, %v497_v33  ;;  %v562_v21 = vmul.f32 %v498_v7, %v498_v7  ;;  %v1713_v18 = vmul.f32 %v559_v10, %v495_v59 }
  0xb0   :  { %v596_v24 = vmul.f32 %v532_v2, %v532_v2  ;;  %v597_v23 = vmul.f32 %v533_v8, %v533_v8  ;;  %vm288_vm1 = vweird.f32 %v1673_v22  ;;  %v1716_v19 = vmul.f32 %v560_v5, %v496_v37 }
  0xb1   :  { %2273 = vst [vmem:[#allocation33_spill] sm:$0xff] %v1711_v3  ;;  %v471_v11 = vmul.f32 %v380_v49, %v1451_v34  ;;  %v284_v20 = vmul.f32 0.5, %v283_v30  ;;  %v383_v26 = vmul.f32 %v1685_v45, %v382_v14  ;;  %v598_v6 = vmul.f32 %v534_v17, %v534_v17  ;;  %v194_v34 = vpop.xlane.xlu0 %193  ;;  %v204_v30 = vpop.xlane.xlu1 %203  ;;  %vm289_vm3 = vmor %vm287_vm15, %vm288_vm1 }
  0xb2   :  { %v659_v50 = vmul.f32 %v595_v51, %v531_v1  ;;  %v472_v52 = vmul.f32 %v380_v49, %v1453_v35  ;;  %v473_v29 = vmul.f32 %v380_v49, %v1457_v39  ;;  %v1722_v46 = vmul.f32 %v561_v25, %v497_v33 }
  0xb3   :  { %v1724_v59 = vmul.f32 %v562_v21, %v498_v7  ;;  %v285_v27 = vsub.f32 1.5, %v284_v20  ;;  %v384_v10 = vmul.f32 0.5, %v383_v26  ;;  %v660_v3 = vmul.f32 %v596_v24, %v532_v2 }
  0xb4   :  { %v661_v37 = vmul.f32 %v597_v23, %v533_v8  ;;  %v474_v5 = vmul.f32 %v380_v49, %v1459_v40  ;;  %vm388_vm2 = vweird.f32 %v1685_v45  ;;  %v535_v14 = vmax.f32 %v471_v11, 1e-06 }
  0xb5   :  { %v286_v1 = vmul.f32 %v1673_v22, %v285_v27  ;;  %v385_v35 = vsub.f32 1.5, %v384_v10  ;;  %1222 = vrsqrt.f32 %v1664_v16  ;;  %v662_v39 = vmul.f32 %v598_v6, %v534_v17  ;;  %vm389_vm4 = vmor %vm387_vm0, %vm388_vm2 }
  0xb6   :  { %v739_v33 = vadd.f32 %v659_v50, %v1675_v0  ;;  %v536_v7 = vmax.f32 %v472_v52, 1e-06  ;;  %v537_v51 = vmax.f32 %v473_v29, 1e-06  ;;  %v1737_v8 = vmax.f32 %v194_v34, 1e-24 }
  0xb7   :  { %v290_v40 = vsel %vm289_vm3, %v1673_v22, %v286_v1  ;;  %v386_v2 = vmul.f32 %v1685_v45, %v385_v35  ;;  %v1739_v49 = vmax.f32 %v204_v30, 1e-24  ;;  %v752_v38 = vadd.f32 %v660_v3, %v1681_v36 }
  0xb8   :  { %v435_v25 = vmul.f32 %v290_v40, %v1463_v42  ;;  %v436_v17 = vmul.f32 %v290_v40, %v1469_v47  ;;  %v437_v0 = vmul.f32 %v290_v40, %v1471_v48  ;;  %v438_v21 = vmul.f32 %v290_v40, %v1481_v57 }
  0xb9   :  { %v538_v22 = vmax.f32 %v474_v5, 1e-06  ;;  %v599_v24 = vmul.f32 %v535_v14, %v535_v14  ;;  %v390_v23 = vsel %vm389_vm4, %v1685_v45, %v386_v2  ;;  %v600_v11 = vmul.f32 %v536_v7, %v536_v7 }
  0xba   :  { %v499_v20 = vmax.f32 %v435_v25, 1e-06  ;;  %v500_v42 = vmax.f32 %v436_v17, 1e-06  ;;  %v475_v47 = vmul.f32 %v390_v23, %v1477_v53  ;;  %v501_v48 = vmax.f32 %v437_v0, 1e-06  ;;  %v239_v25 = vpop.xlane.xlu0 %238 }
  0xbb   :  { %v1752_v26 = vpop.eup %1222  ;;  %v502_v57 = vmax.f32 %v438_v21, 1e-06  ;;  %v476_v6 = vmul.f32 %v390_v23, %v1479_v54  ;;  %1224 = vrsqrt.f32 %v1737_v8  ;;  %v601_v58 = vmul.f32 %v537_v51, %v537_v51 }
  0xbc   :  { %v477_v36 = vmul.f32 %v390_v23, %v1491_v63  ;;  %v478_v3 = vmul.f32 %v390_v23, %v1513_v32  ;;  %1226 = vrsqrt.f32 %v1739_v49  ;;  %v765_v45 = vadd.f32 %v661_v37, %v1687_v4  ;;  %v244_v4 = vpop.xlane.xlu2 %243 }
  0xbd   :  { %v602_v50 = vmul.f32 %v538_v22, %v538_v22  ;;  %v563_v52 = vmul.f32 %v499_v20, %v499_v20  ;;  %v539_v53 = vmax.f32 %v475_v47, 1e-06  ;;  %v778_v29 = vadd.f32 %v662_v39, %v1693_v28 }
  0xbe   :  { %v564_v27 = vmul.f32 %v500_v42, %v500_v42  ;;  %v312_v54 = vmul.f32 %v1752_v26, %v1664_v16  ;;  %vm317_vm5 = vweird.f32 %v1664_v16  ;;  %v663_v10 = vmul.f32 %v599_v24, %v535_v14 }
  0xbf   :  { %v565_v5 = vmul.f32 %v501_v48, %v501_v48  ;;  %v566_v63 = vmul.f32 %v502_v57, %v502_v57  ;;  %v540_v34 = vmax.f32 %v476_v6, 1e-06  ;;  %v664_v32 = vmul.f32 %v600_v11, %v536_v7 }
  0xc0   :  { %v665_v30 = vmul.f32 %v601_v58, %v537_v51  ;;  %v541_v1 = vmax.f32 %v477_v36, 1e-06  ;;  %v542_v35 = vmax.f32 %v478_v3, 1e-06  ;;  %v666_v40 = vmul.f32 %v602_v50, %v538_v22 }
  0xc1   :  { %v1764_v37 = vpop.eup %1224  ;;  %v740_v2 = vadd.f32 %v739_v33, %v663_v10  ;;  %v627_v28 = vmul.f32 %v563_v52, %v499_v20  ;;  %v603_v39 = vmul.f32 %v539_v53, %v539_v53  ;;  %v753_v0 = vadd.f32 %v752_v38, %v664_v32 }
  0xc2   :  { %v1766_v17 = vpop.eup %1226  ;;  %v766_v21 = vadd.f32 %v765_v45, %v665_v30  ;;  %v628_v14 = vmul.f32 %v564_v27, %v500_v42  ;;  %v313_v24 = vmul.f32 %v1752_v26, %v312_v54  ;;  %v779_v23 = vadd.f32 %v778_v29, %v666_v40  ;;  %v249_v27 = vpop.xlane.xlu1 %248 }
  0xc3   :  { %v629_v7 = vmul.f32 %v565_v5, %v501_v48  ;;  %v630_v51 = vmul.f32 %v566_v63, %v502_v57  ;;  %v604_v11 = vmul.f32 %v540_v34, %v540_v34  ;;  %v605_v47 = vmul.f32 %v541_v1, %v541_v1 }
  0xc4   :  { %v606_v6 = vmul.f32 %v542_v35, %v542_v35  ;;  %v314_v58 = vmul.f32 0.5, %v313_v24  ;;  %v302_v33 = vmul.f32 %v1764_v37, %v1737_v8  ;;  %vm307_vm6 = vweird.f32 %v1737_v8 }
  0xc5   :  { %v687_v22 = vadd.f32 %v627_v28, %v1713_v18  ;;  %v667_v20 = vmul.f32 %v603_v39, %v539_v53  ;;  %vm318_vm7 = vweird.f32 %v1752_v26  ;;  %v322_v38 = vmul.f32 %v1766_v17, %v1739_v49 }
  0xc6   :  { %v700_v42 = vadd.f32 %v628_v14, %v1716_v19  ;;  %v315_v48 = vsub.f32 1.5, %v314_v58  ;;  %v303_v57 = vmul.f32 %v1764_v37, %v302_v33  ;;  %v1778_v36 = vmax.f32 %v244_v4, 1e-24  ;;  %vm319_vm9 = vmor %vm317_vm5, %vm318_vm7 }
  0xc7   :  { %v1781_v3 = vadd.f32 %v629_v7, %v1722_v46  ;;  %v1784_v45 = vadd.f32 %v630_v51, %v1724_v59  ;;  %v668_v18 = vmul.f32 %v604_v11, %v540_v34  ;;  %v323_v50 = vmul.f32 %v1766_v17, %v322_v38  ;;  %v214_v34 = vpop.xlane.xlu2 %213 }
  0xc8   :  { %vm327_vm8 = vweird.f32 %v1739_v49  ;;  %v669_v52 = vmul.f32 %v605_v47, %v541_v1  ;;  %v670_v53 = vmul.f32 %v606_v6, %v542_v35  ;;  %v316_v19 = vmul.f32 %v1752_v26, %v315_v48  ;;  %v209_v1 = vpop.xlane.xlu0 %208  ;;  %v2274_v48 = vld [vmem:[#allocation15_spill] sm:$0xff] }
  0xc9   :  { %v304_v29 = vmul.f32 0.5, %v303_v57  ;;  %v1789_v54 = vadd.f32 %v740_v2, %v667_v20  ;;  %v1796_v46 = vadd.f32 %v687_v22, %v1695_v62  ;;  %vm308_vm10 = vweird.f32 %v1764_v37 }
  0xca   :  { %v324_v59 = vmul.f32 0.5, %v323_v50  ;;  %v320_v10 = vsel %vm319_vm9, %v1752_v26, %v316_v19  ;;  %1228 = vrsqrt.f32 %v1778_v36  ;;  %v1801_v63 = vmax.f32 %v239_v25, 1e-24  ;;  %vm309_vm11 = vmor %vm307_vm6, %vm308_vm10 }
  0xcb   :  { %v305_v5 = vsub.f32 1.5, %v304_v29  ;;  %v1803_v32 = vadd.f32 %v753_v0, %v668_v18  ;;  %v447_v30 = vmul.f32 %v320_v10, %v1487_v60  ;;  %v1807_v16 = vadd.f32 %v700_v42, %v1706_v9  ;;  %v2275_v18 = vld [vmem:[#allocation18_spill] sm:$0xff] }
  0xcc   :  { %v1809_v62 = vmax.f32 %v249_v27, 1e-24  ;;  %v1811_v35 = vadd.f32 %v766_v21, %v669_v52  ;;  %v448_v26 = vmul.f32 %v320_v10, %v1489_v61  ;;  %v325_v40 = vsub.f32 1.5, %v324_v59 }
  0xcd   :  { %v306_v4 = vmul.f32 %v1764_v37, %v305_v5  ;;  %v1815_v2 = vadd.f32 %v779_v23, %v670_v53  ;;  %v449_v28 = vmul.f32 %v320_v10, %v1497_v12  ;;  %v450_v39 = vmul.f32 %v320_v10, %v1525_v44 }
  0xce   :  { %v1823_v60 = vmax.f32 %v214_v34, 1e-24  ;;  %vm328_vm12 = vweird.f32 %v1766_v17  ;;  %1230 = vrsqrt.f32 %v1801_v63  ;;  %v1828_v61 = vmax.f32 %v209_v1, 1e-24 }
  0xcf   :  { %v310_v9 = vsel %vm309_vm11, %v1764_v37, %v306_v4  ;;  %v511_v25 = vmax.f32 %v447_v30, 1e-06  ;;  %v326_v44 = vmul.f32 %v1766_v17, %v325_v40  ;;  %1232 = vrsqrt.f32 %v1809_v62  ;;  %vm329_vm13 = vmor %vm327_vm8, %vm328_vm12 }
  0xd0   :  { %v443_v12 = vmul.f32 %v310_v9, %v1499_v13  ;;  %v1833_v0 = vpop.eup %1228  ;;  %v512_v8 = vmax.f32 %v448_v26, 1e-06  ;;  %v444_v21 = vmul.f32 %v310_v9, %v1501_v15  ;;  %v445_v37 = vmul.f32 %v310_v9, %v1511_v31 }
  0xd1   :  { %v446_v14 = vmul.f32 %v310_v9, %v1535_v56  ;;  %v513_v24 = vmax.f32 %v449_v28, 1e-06  ;;  %v514_v23 = vmax.f32 %v450_v39, 1e-06  ;;  %1234 = vrsqrt.f32 %v1823_v60 }
  0xd2   :  { %v507_v7 = vmax.f32 %v443_v12, 1e-06  ;;  %v508_v51 = vmax.f32 %v444_v21, 1e-06  ;;  %v509_v13 = vmax.f32 %v445_v37, 1e-06  ;;  %1236 = vrsqrt.f32 %v1828_v61 }
  0xd3   :  { %v510_v11 = vmax.f32 %v446_v14, 1e-06  ;;  %v575_v15 = vmul.f32 %v511_v25, %v511_v25  ;;  %v330_v31 = vsel %vm329_vm13, %v1766_v17, %v326_v44  ;;  %v402_v56 = vmul.f32 %v1833_v0, %v1778_v36 }
  0xd4   :  { %v571_v47 = vmul.f32 %v507_v7, %v507_v7  ;;  %v1847_v6 = vpop.eup %1230  ;;  %v572_v58 = vmul.f32 %v508_v51, %v508_v51  ;;  %v573_v33 = vmul.f32 %v509_v13, %v509_v13  ;;  %v451_v20 = vmul.f32 %v330_v31, %v1521_v41 }
  0xd5   :  { %v574_v22 = vmul.f32 %v510_v11, %v510_v11  ;;  %v1850_v38 = vpop.eup %1232  ;;  %v452_v42 = vmul.f32 %v330_v31, %v1523_v43  ;;  %v453_v57 = vmul.f32 %v330_v31, %v2274_v48  ;;  %v454_v50 = vmul.f32 %v330_v31, %v2275_v18  ;;  %v2276_v43 = vld [vmem:[#allocation33_spill] sm:$0xff] }
  0xd6   :  { %v635_v49 = vmul.f32 %v571_v47, %v507_v7  ;;  %v576_v17 = vmul.f32 %v512_v8, %v512_v8  ;;  %v577_v52 = vmul.f32 %v513_v24, %v513_v24  ;;  %v578_v53 = vmul.f32 %v514_v23, %v514_v23 }
  0xd7   :  { %v515_v19 = vmax.f32 %v451_v20, 1e-06  ;;  %v1855_v29 = vpop.eup %1234  ;;  %v714_v27 = vadd.f32 %v1781_v3, %v1709_v55  ;;  %v636_v59 = vmul.f32 %v572_v58, %v508_v51  ;;  %v637_v41 = vmul.f32 %v573_v33, %v509_v13  ;;  %v254_v20 = vpop.xlane.xlu0 %253 }
  0xd8   :  { %v403_v10 = vmul.f32 %v1833_v0, %v402_v56  ;;  %v1860_v5 = vpop.eup %1236  ;;  %v727_v34 = vadd.f32 %v1784_v45, %v2276_v43  ;;  %v638_v30 = vmul.f32 %v574_v22, %v510_v11  ;;  %v516_v1 = vmax.f32 %v452_v42, 1e-06 }
  0xd9   :  { %vm407_vm14 = vweird.f32 %v1778_v36  ;;  %v639_v26 = vmul.f32 %v575_v15, %v511_v25  ;;  %v689_v4 = vadd.f32 %v1796_v46, %v635_v49  ;;  %v517_v40 = vmax.f32 %v453_v57, 1e-06  ;;  %v2277_v57 = vld [vmem:[#allocation11_spill] sm:$0xff] }
  0xda   :  { %v518_v28 = vmax.f32 %v454_v50, 1e-06  ;;  %v640_v39 = vmul.f32 %v576_v17, %v512_v8  ;;  %v641_v55 = vmul.f32 %v577_v52, %v513_v24  ;;  %v642_v3 = vmul.f32 %v578_v53, %v514_v23  ;;  %v2278_v50 = vld [vmem:[#allocation12_spill] sm:$0xff] }
  0xdb   :  { %v579_v9 = vmul.f32 %v515_v19, %v515_v19  ;;  %v702_v12 = vadd.f32 %v1807_v16, %v636_v59  ;;  %v715_v44 = vadd.f32 %v714_v27, %v637_v41  ;;  %v404_v21 = vmul.f32 0.5, %v403_v10  ;;  %v2279_v52 = vld [vmem:[#allocation16_spill] sm:$0xff]  ;;  %v2280_v10 = vld [vmem:[#allocation21_spill] sm:$0xff] }
  0xdc   :  { %vm408_vm15 = vweird.f32 %v1833_v0  ;;  %vm417_vm0 = vweird.f32 %v1809_v62  ;;  %v728_v45 = vadd.f32 %v727_v34, %v638_v30  ;;  %v580_v37 = vmul.f32 %v516_v1, %v516_v1 }
  0xdd   :  { %v392_v25 = vmul.f32 %v1847_v6, %v1801_v63  ;;  %vm397_vm1 = vweird.f32 %v1801_v63  ;;  %v412_v46 = vmul.f32 %v1850_v38, %v1809_v62  ;;  %v581_v8 = vmul.f32 %v517_v40, %v517_v40  ;;  %vm409_vm2 = vmor %vm407_vm14, %vm408_vm15  ;;  %v2282_v62 = vld [vmem:[#allocation14_spill] sm:$0xff] }
  0xde   :  { %v582_v14 = vmul.f32 %v518_v28, %v518_v28  ;;  %v690_v24 = vadd.f32 %v689_v4, %v639_v26  ;;  %v405_v16 = vsub.f32 1.5, %v404_v21  ;;  %v643_v23 = vmul.f32 %v579_v9, %v515_v19 }
  0xdf   :  { %v393_v7 = vmul.f32 %v1847_v6, %v392_v25  ;;  %v413_v51 = vmul.f32 %v1850_v38, %v412_v46  ;;  %v342_v13 = vmul.f32 %v1855_v29, %v1823_v60  ;;  %v703_v11 = vadd.f32 %v702_v12, %v640_v39  ;;  %v2283_v46 = vld [vmem:[#allocation17_spill] sm:$0xff] }
  0xe0   :  { %v716_v15 = vadd.f32 %v715_v44, %v641_v55  ;;  %v406_v47 = vmul.f32 %v1833_v0, %v405_v16  ;;  %v332_v31 = vmul.f32 %v1860_v5, %v1828_v61  ;;  %v1881_v56 = vadd.f32 %v728_v45, %v642_v3  ;;  %v2281_v44 = vld [vmem:[#allocation13_spill] sm:$0xff] }
  0xe1   :  { %v394_v58 = vmul.f32 0.5, %v393_v7  ;;  %v414_v33 = vmul.f32 0.5, %v413_v51  ;;  %v343_v22 = vmul.f32 %v1855_v29, %v342_v13  ;;  %v644_v49 = vmul.f32 %v580_v37, %v516_v1 }
  0xe2   :  { %v645_v42 = vmul.f32 %v581_v8, %v517_v40  ;;  %v410_v48 = vsel %vm409_vm2, %v1833_v0, %v406_v47  ;;  %vm398_vm3 = vweird.f32 %v1847_v6  ;;  %vm418_vm4 = vweird.f32 %v1850_v38 }
  0xe3   :  { %v483_v18 = vmul.f32 %v410_v48, %v2277_v57  ;;  %v484_v17 = vmul.f32 %v410_v48, %v2278_v50  ;;  %v333_v36 = vmul.f32 %v1860_v5, %v332_v31  ;;  %v485_v53 = vmul.f32 %v410_v48, %v2279_v52  ;;  %vm399_vm5 = vmor %vm397_vm1, %vm398_vm3  ;;  %v2288_v31 = vld [vmem:[#allocation30_spill] sm:$0xff] }
  0xe4   :  { %v395_v19 = vsub.f32 1.5, %v394_v58  ;;  %v415_v27 = vsub.f32 1.5, %v414_v33  ;;  %v1895_v59 = vmax.f32 %v254_v20, 1e-24  ;;  %v646_v41 = vmul.f32 %v582_v14, %v518_v28  ;;  %vm419_vm6 = vmor %vm417_vm0, %vm418_vm4  ;;  %v2284_v14 = vld [vmem:[#allocation24_spill] sm:$0xff] }
  0xe5   :  { %v486_v43 = vmul.f32 %v410_v48, %v2280_v10  ;;  %v547_v0 = vmax.f32 %v483_v18, 1e-06  ;;  %v344_v34 = vmul.f32 0.5, %v343_v22  ;;  %v1898_v30 = vadd.f32 %v690_v24, %v643_v23  ;;  %v2285_v23 = vld [vmem:[#allocation19_spill] sm:$0xff] }
  0xe6   :  { %v548_v1 = vmax.f32 %v484_v17, 1e-06  ;;  %v396_v26 = vmul.f32 %v1847_v6, %v395_v19  ;;  %v416_v4 = vmul.f32 %v1850_v38, %v415_v27  ;;  %v1906_v40 = vadd.f32 %v703_v11, %v644_v49 }
  0xe7   :  { %v1908_v39 = vadd.f32 %v716_v15, %v645_v42  ;;  %vm347_vm7 = vweird.f32 %v1823_v60  ;;  %vm348_vm8 = vweird.f32 %v1855_v29  ;;  %v334_v28 = vmul.f32 0.5, %v333_v36 }
  0xe8   :  { %v549_v55 = vmax.f32 %v485_v53, 1e-06  ;;  %v400_v63 = vsel %vm399_vm5, %v1847_v6, %v396_v26  ;;  %v420_v3 = vsel %vm419_vm6, %v1850_v38, %v416_v4  ;;  %1238 = vrsqrt.f32 %v1895_v59  ;;  %v2286_v6 = vld [vmem:[#allocation20_spill] sm:$0xff]  ;;  %v2287_v38 = vld [vmem:[#allocation27_spill] sm:$0xff]  ;;  %vm349_vm11 = vmor %vm347_vm7, %vm348_vm8 }
  0xe9   :  { %v550_v9 = vmax.f32 %v486_v43, 1e-06  ;;  %v611_v12 = vmul.f32 %v547_v0, %v547_v0  ;;  %v479_v21 = vmul.f32 %v400_v63, %v2281_v44  ;;  %v345_v45 = vsub.f32 1.5, %v344_v34 }
  0xea   :  { %v612_v37 = vmul.f32 %v548_v1, %v548_v1  ;;  %v480_v25 = vmul.f32 %v400_v63, %v2282_v62  ;;  %v481_v8 = vmul.f32 %v400_v63, %v2283_v46  ;;  %v482_v24 = vmul.f32 %v400_v63, %v2284_v14  ;;  %v2291_v46 = vld [vmem:[#allocation28_spill] sm:$0xff] }
  0xeb   :  { %v543_v16 = vmax.f32 %v479_v21, 1e-06  ;;  %v487_v7 = vmul.f32 %v420_v3, %v2285_v23  ;;  %v488_v51 = vmul.f32 %v420_v3, %v2286_v6  ;;  %v489_v13 = vmul.f32 %v420_v3, %v2287_v38  ;;  %v2293_v38 = vld [vmem:[#allocation25_spill] sm:$0xff] }
  0xec   :  { %v544_v11 = vmax.f32 %v480_v25, 1e-06  ;;  %v545_v15 = vmax.f32 %v481_v8, 1e-06  ;;  %v546_v47 = vmax.f32 %v482_v24, 1e-06  ;;  %v490_v58 = vmul.f32 %v420_v3, %v2288_v31 }
  0xed   :  { %v607_v33 = vmul.f32 %v543_v16, %v543_v16  ;;  %v551_v22 = vmax.f32 %v487_v7, 1e-06  ;;  %v552_v20 = vmax.f32 %v488_v51, 1e-06  ;;  %v553_v49 = vmax.f32 %v489_v13, 1e-06 }
  0xee   :  { %vm337_vm9 = vweird.f32 %v1828_v61  ;;  %v1928_v42 = vpop.eup %1238  ;;  %v613_v48 = vmul.f32 %v549_v55, %v549_v55  ;;  %v608_v57 = vmul.f32 %v544_v11, %v544_v11  ;;  %v609_v18 = vmul.f32 %v545_v15, %v545_v15  ;;  %v2290_v25 = vld [vmem:[#allocation23_spill] sm:$0xff] }
  0xef   :  { %v610_v50 = vmul.f32 %v546_v47, %v546_v47  ;;  %v614_v17 = vmul.f32 %v550_v9, %v550_v9  ;;  %v554_v36 = vmax.f32 %v490_v58, 1e-06  ;;  %v346_v52 = vmul.f32 %v1855_v29, %v345_v45  ;;  %v2289_v45 = vld [vmem:[#allocation22_spill] sm:$0xff]  ;;  %v2292_v8 = vld [vmem:[#allocation31_spill] sm:$0xff]  ;;  %v2296_v58 = vld [vmem:[#allocation32_spill] sm:$0xff] }
  0xf0   :  { %v335_v53 = vsub.f32 1.5, %v334_v28  ;;  %v1932_v19 = vadd.f32 %v1881_v56, %v646_v41  ;;  %v671_v27 = vmul.f32 %v607_v33, %v543_v16  ;;  %v615_v10 = vmul.f32 %v551_v22, %v551_v22 }
  0xf1   :  { %v616_v43 = vmul.f32 %v552_v20, %v552_v20  ;;  %v675_v34 = vmul.f32 %v611_v12, %v547_v0  ;;  %v676_v26 = vmul.f32 %v612_v37, %v548_v1  ;;  %v617_v4 = vmul.f32 %v553_v49, %v553_v49 }
  0xf2   :  { %vm338_vm10 = vweird.f32 %v1860_v5  ;;  %v677_v63 = vmul.f32 %v613_v48, %v549_v55  ;;  %v672_v3 = vmul.f32 %v608_v57, %v544_v11  ;;  %v673_v44 = vmul.f32 %v609_v18, %v545_v15 }
  0xf3   :  { %v674_v21 = vmul.f32 %v610_v50, %v546_v47  ;;  %v1939_v28 = vmul.f32 %v614_v17, %v550_v9  ;;  %v618_v56 = vmul.f32 %v554_v36, %v554_v36  ;;  %v350_v41 = vsel %vm349_vm11, %v1855_v29, %v346_v52  ;;  %vm339_vm12 = vmor %vm337_vm9, %vm338_vm10 }
  0xf4   :  { %v336_v0 = vmul.f32 %v1860_v5, %v335_v53  ;;  %v742_v1 = vadd.f32 %v1789_v54, %v671_v27  ;;  %v1944_v12 = vmul.f32 %v615_v10, %v551_v22  ;;  %v1946_v55 = vmul.f32 %v616_v43, %v552_v20  ;;  %v822_v27 = vld [vmem:[#allocation5 + $0x78] sm:$0xff] }
  0xf5   :  { %v459_v37 = vmul.f32 %v350_v41, %v2289_v45  ;;  %v1949_v62 = vmul.f32 %v617_v4, %v553_v49  ;;  %v460_v60 = vmul.f32 %v350_v41, %v2290_v25  ;;  %v461_v9 = vmul.f32 %v350_v41, %v2291_v46  ;;  %v838_v10 = vld [vmem:[#allocation5 + $0xf8] sm:$0xff]  ;;  %892 = vmatpush.msra.mxu0 %v822_v27  ;;  %v869_v45 = vld [vmem:[#allocation5 + $0x1f0] sm:$0xff]  ;;  %v820_v46 = vld [vmem:[#allocation5 + $0x68] sm:$0xff] }
  0xf6   :  { %v462_v14 = vmul.f32 %v350_v41, %v2292_v8  ;;  %v755_v29 = vadd.f32 %v1803_v32, %v672_v3  ;;  %v768_v24 = vadd.f32 %v1811_v35, %v673_v44  ;;  %v1957_v54 = vadd.f32 %v1815_v2, %v674_v21  ;;  %v2294_v32 = vld [vmem:[#allocation26_spill] sm:$0xff]  ;;  %v2295_v35 = vld [vmem:[#allocation29_spill] sm:$0xff]  ;;  %912 = vmatpush.msra.mxu1 %v838_v10  ;;  %v852_v8 = vld [vmem:[#allocation5 + $0x168] sm:$0xff] }
  0xf7   :  { %v523_v16 = vmax.f32 %v459_v37, 1e-06  ;;  %v1963_v23 = vmul.f32 %v618_v56, %v554_v36  ;;  %v524_v7 = vmax.f32 %v460_v60, 1e-06  ;;  %v525_v6 = vmax.f32 %v461_v9, 1e-06 }
  0xf8   :  { %v340_v51 = vsel %vm339_vm12, %v1860_v5, %v336_v0  ;;  %v422_v2 = vmul.f32 %v1928_v42, %v1895_v59  ;;  %v1971_v47 = vadd.f32 %v742_v1, %v675_v34  ;;  %v526_v31 = vmax.f32 %v462_v14, 1e-06  ;;  %v854_v43 = vld [vmem:[#allocation5 + $0x178] sm:$0xff]  ;;  %v821_v44 = vld [vmem:[#allocation5 + $0x70] sm:$0xff]  ;;  %v836_v9 = vld [vmem:[#allocation5 + $0xe8] sm:$0xff] }
  0xf9   :  { %v455_v13 = vmul.f32 %v340_v51, %v2293_v38  ;;  %v456_v11 = vmul.f32 %v340_v51, %v2294_v32  ;;  %v457_v15 = vmul.f32 %v340_v51, %v2295_v35  ;;  %v587_v61 = vmul.f32 %v523_v16, %v523_v16  ;;  %v870_v3 = vld [vmem:[#allocation5 + $0x1f8] sm:$0xff]  ;;  %932 = vmatpush.msra.mxu2 %v854_v43  ;;  %v853_v1 = vld [vmem:[#allocation5 + $0x170] sm:$0xff] }
  0xfa   :  { %v458_v33 = vmul.f32 %v340_v51, %v2296_v58  ;;  %v1974_v22 = vadd.f32 %v755_v29, %v676_v26  ;;  %v1976_v48 = vadd.f32 %v768_v24, %v677_v63  ;;  %v588_v57 = vmul.f32 %v524_v7, %v524_v7  ;;  %v837_v63 = vld [vmem:[#allocation5 + $0xf0] sm:$0xff]  ;;  %952 = vmatpush.msra.mxu3 %v870_v3  ;;  %v868_v51 = vld [vmem:[#allocation5 + $0x1e8] sm:$0xff] }
  0xfb   :  { %v519_v20 = vmax.f32 %v455_v13, 1e-06  ;;  %v520_v49 = vmax.f32 %v456_v11, 1e-06  ;;  %v521_v5 = vmax.f32 %v457_v15, 1e-06  ;;  %v589_v18 = vmul.f32 %v525_v6, %v525_v6  ;;  %893 = vmatpush.msra.mxu0 %v821_v44  ;;  %913 = vmatpush.msra.mxu1 %v837_v63 }
  0xfc   :  { %v522_v50 = vmax.f32 %v458_v33, 1e-06  ;;  %v423_v53 = vmul.f32 %v1928_v42, %v422_v2  ;;  %v590_v34 = vmul.f32 %v526_v31, %v526_v31  ;;  %v651_v4 = vmul.f32 %v587_v61, %v523_v16  ;;  %933 = vmatpush.msra.mxu2 %v853_v1  ;;  %953 = vmatpush.msra.mxu3 %v869_v45  ;;  %v867_v15 = vld [vmem:[#allocation5 + $0x1e0] sm:$0xff]  ;;  %v818_v2 = vld [vmem:[#allocation5 + $0x58] sm:$0xff]  ;;  %v849_v10 = vld [vmem:[#allocation5 + $0x150] sm:$0xff] }
  0xfd   :  { %v583_v17 = vmul.f32 %v519_v20, %v519_v20  ;;  %v584_v36 = vmul.f32 %v520_v49, %v520_v49  ;;  %v585_v52 = vmul.f32 %v521_v5, %v521_v5  ;;  %v652_v37 = vmul.f32 %v588_v57, %v524_v7  ;;  %v819_v7 = vld [vmem:[#allocation5 + $0x60] sm:$0xff]  ;;  %894 = vmatpush.msra.mxu0 %v820_v46  ;;  %v865_v43 = vld [vmem:[#allocation5 + $0x1d0] sm:$0xff] }
  0xfe   :  { %v586_v26 = vmul.f32 %v522_v50, %v522_v50  ;;  %v424_v0 = vmul.f32 0.5, %v423_v53  ;;  %v653_v25 = vmul.f32 %v589_v18, %v525_v6  ;;  %vm428_vm13 = vweird.f32 %v1928_v42  ;;  %914 = vmatpush.msra.mxu1 %v836_v9  ;;  %934 = vmatpush.msra.mxu2 %v852_v8  ;;  %v815_v8 = vld [vmem:[#allocation5 + $0x40] sm:$0xff] }
  0xff   :  { %v647_v21 = vmul.f32 %v583_v17, %v519_v20  ;;  %v648_v56 = vmul.f32 %v584_v36, %v520_v49  ;;  %v649_v41 = vmul.f32 %v585_v52, %v521_v5  ;;  %v1985_v6 = vadd.f32 %v1957_v54, %v1939_v28  ;;  %954 = vmatpush.msra.mxu3 %v868_v51  ;;  %v1274_v20 = vld [vmem:[#allocation2 + $0x1e0] sm:$0xff]  ;;  %v1275_v5 = vld [vmem:[#allocation2 + $0x1e8] sm:$0xff]  ;;  %v833_v17 = vld [vmem:[#allocation5 + $0xd0] sm:$0xff] }
 0x100   :  { %v650_v60 = vmul.f32 %v586_v26, %v522_v50  ;;  %v425_v16 = vsub.f32 1.5, %v424_v0  ;;  %v654_v38 = vmul.f32 %v590_v34, %v526_v31  ;;  %vm427_vm14 = vweird.f32 %v1895_v59  ;;  %895 = vmatpush.msra.mxu0 %v819_v7  ;;  %v834_v31 = vld [vmem:[#allocation5 + $0xd8] sm:$0xff]  ;;  %v1276_v59 = vld [vmem:[#allocation2 + $0x1f0] sm:$0xff]  ;;  %v816_v34 = vld [vmem:[#allocation5 + $0x48] sm:$0xff] }
 0x101   :  { %v692_v14 = vadd.f32 %v1898_v30, %v647_v21  ;;  %v705_v29 = vadd.f32 %v1906_v40, %v648_v56  ;;  %v718_v24 = vadd.f32 %v1908_v39, %v649_v41  ;;  %v835_v30 = vld [vmem:[#allocation5 + $0xe0] sm:$0xff]  ;;  %v1992_v28 = vadd.f32 %v1971_v47, %v1944_v12  ;;  %vm429_vm15 = vmor %vm427_vm14, %vm428_vm13  ;;  %v850_v47 = vld [vmem:[#allocation5 + $0x158] sm:$0xff]  ;;  %955 = vmatpush.msra.mxu3 %v867_v15 }
 0x102   :  { %v731_v13 = vadd.f32 %v1932_v19, %v650_v60  ;;  %v851_v40 = vld [vmem:[#allocation5 + $0x160] sm:$0xff]  ;;  %v426_v35 = vmul.f32 %v1928_v42, %v425_v16  ;;  %v1996_v19 = vadd.f32 %v1974_v22, %v1946_v55  ;;  %915 = vmatpush.msra.mxu1 %v835_v30  ;;  %v866_v55 = vld [vmem:[#allocation5 + $0x1d8] sm:$0xff]  ;;  %896 = vmatpush.msra.mxu0 %v818_v2  ;;  %v817_v50 = vld [vmem:[#allocation5 + $0x50] sm:$0xff] }
 0x103   :  { %v693_v32 = vadd.f32 %v692_v14, %v651_v4  ;;  %v706_v39 = vadd.f32 %v705_v29, %v652_v37  ;;  %v719_v11 = vadd.f32 %v718_v24, %v653_v25  ;;  %935 = vmatpush.msra.mxu2 %v851_v40  ;;  %v770_v4 = vadd.f32 %v1976_v48, %v1949_v62  ;;  %v832_v0 = vld [vmem:[#allocation5 + $0xc8] sm:$0xff]  ;;  %v831_v14 = vld [vmem:[#allocation5 + $0xc0] sm:$0xff]  ;;  %v846_v15 = vld [vmem:[#allocation5 + $0x138] sm:$0xff] }
 0x104   :  { %v1998_v54 = vadd.f32 %v731_v13, %v654_v38  ;;  %v430_v12 = vsel %vm429_vm15, %v1928_v42, %v426_v35  ;;  %v1277_v42 = vld [vmem:[#allocation2 + $0x1f8] sm:$0xff]  ;;  %916 = vmatpush.msra.mxu1 %v834_v31  ;;  %956 = vmatpush.msra.mxu3 %v866_v55  ;;  %v848_v25 = vld [vmem:[#allocation5 + $0x148] sm:$0xff]  ;;  %v783_v29 = vadd.f32 %v1985_v6, %v1963_v23  ;;  %v847_v7 = vld [vmem:[#allocation5 + $0x140] sm:$0xff] }
 0x105   :  { %v694_v61 = vrot.slane %v693_v32, 4  ;;  %v707_v58 = vrot.slane %v706_v39, 4  ;;  %v720_v33 = vrot.slane %v719_v11, 4  ;;  %v491_v49 = vmul.f32 %v1274_v20, %v430_v12  ;;  %936 = vmatpush.msra.mxu2 %v850_v47  ;;  %897 = vmatpush.msra.mxu0 %v817_v50  ;;  %v864_v60 = vld [vmem:[#allocation5 + $0x1c8] sm:$0xff]  ;;  %v863_v38 = vld [vmem:[#allocation5 + $0x1c0] sm:$0xff]  ;;  %v862_v2 = vld [vmem:[#allocation5 + $0x1b8] sm:$0xff] }
 0x106   :  { %v733_v22 = vrot.slane %v1998_v54, 4  ;;  %v492_v57 = vmul.f32 %v1275_v5, %v430_v12  ;;  %v493_v18 = vmul.f32 %v1276_v59, %v430_v12  ;;  %v494_v27 = vmul.f32 %v1277_v42, %v430_v12  ;;  %917 = vmatpush.msra.mxu1 %v833_v17  ;;  %957 = vmatpush.msra.mxu3 %v865_v43  ;;  %v828_v5 = vld [vmem:[#allocation5 + $0xa8] sm:$0xff]  ;;  %v843_v43 = vld [vmem:[#allocation5 + $0x120] sm:$0xff] }
 0x107   :  { %v695_v36 = vadd.f32 %v694_v61, %v693_v32  ;;  %v708_v52 = vadd.f32 %v707_v58, %v706_v39  ;;  %v721_v53 = vadd.f32 %v720_v33, %v719_v11  ;;  %v555_v26 = vmax.f32 %v491_v49, 1e-06  ;;  %937 = vmatpush.msra.mxu2 %v849_v10  ;;  %898 = vmatpush.msra.mxu0 %v816_v34  ;;  %v814_v39 = vld [vmem:[#allocation5 + $0x38] sm:$0xff]  ;;  %v829_v58 = vld [vmem:[#allocation5 + $0xb0] sm:$0xff]  ;;  %v812_v49 = vld [vmem:[#allocation5 + $0x28] sm:$0xff] }
 0x108   :  { %v556_v3 = vmax.f32 %v492_v57, 1e-06  ;;  %v557_v44 = vmax.f32 %v493_v18, 1e-06  ;;  %v558_v41 = vmax.f32 %v494_v27, 1e-06  ;;  %918 = vmatpush.msra.mxu1 %v832_v0  ;;  %v2013_v40 = vadd.f32 %v733_v22, %v1998_v54  ;;  %958 = vmatpush.msra.mxu3 %v864_v60 }
 0x109   :  { %v696_v63 = vrot.slane %v695_v36, 2  ;;  %v709_v21 = vrot.slane %v708_v52, 2  ;;  %v722_v56 = vrot.slane %v721_v53, 2  ;;  %v619_v1 = vmul.f32 %v555_v26, %v555_v26  ;;  %938 = vmatpush.msra.mxu2 %v848_v25  ;;  %v830_v11 = vld [vmem:[#allocation5 + $0xb8] sm:$0xff]  ;;  %899 = vmatpush.msra.mxu0 %v815_v8  ;;  %v813_v54 = vld [vmem:[#allocation5 + $0x30] sm:$0xff]  ;;  %v811_v27 = vld [vmem:[#allocation5 + $0x20] sm:$0xff] }
 0x10a   :  { %v620_v45 = vmul.f32 %v556_v3, %v556_v3  ;;  %v621_v37 = vmul.f32 %v557_v44, %v557_v44  ;;  %v622_v9 = vmul.f32 %v558_v41, %v558_v41  ;;  %919 = vmatpush.msra.mxu1 %v831_v14  ;;  %959 = vmatpush.msra.mxu3 %v863_v38  ;;  %v827_v10 = vld [vmem:[#allocation5 + $0xa0] sm:$0xff]  ;;  %v842_v25 = vld [vmem:[#allocation5 + $0x118] sm:$0xff]  ;;  %v824_v38 = vld [vmem:[#allocation5 + $0x88] sm:$0xff] }
 0x10b   :  { %v697_v62 = vadd.f32 %v696_v63, %v695_v36  ;;  %v710_v48 = vadd.f32 %v709_v21, %v708_v52  ;;  %v2008_v46 = vadd.f32 %v722_v56, %v721_v53  ;;  %v683_v24 = vmul.f32 %v619_v1, %v555_v26  ;;  %939 = vmatpush.msra.mxu2 %v847_v7  ;;  %v844_v36 = vld [vmem:[#allocation5 + $0x128] sm:$0xff]  ;;  %v810_v56 = vld [vmem:[#allocation5 + $0x18] sm:$0xff] }
 0x10c   :  { %v684_v16 = vmul.f32 %v620_v45, %v556_v3  ;;  %v685_v51 = vmul.f32 %v621_v37, %v557_v44  ;;  %v686_v32 = vmul.f32 %v622_v9, %v558_v41  ;;  %900 = vmatpush.msra.mxu0 %v814_v39  ;;  %920 = vmatpush.msra.mxu1 %v830_v11  ;;  %v860_v52 = vld [vmem:[#allocation5 + $0x1a8] sm:$0xff]  ;;  %v735_v53 = vrot.slane %v2013_v40, 2  ;;  %v859_v44 = vld [vmem:[#allocation5 + $0x1a0] sm:$0xff]  ;;  %v826_v41 = vld [vmem:[#allocation5 + $0x98] sm:$0xff] }
 0x10d   :  { %v698_v13 = vrot.slane %v697_v62, 1  ;;  %v711_v30 = vrot.slane %v710_v48, 1  ;;  %v745_v35 = vadd.f32 %v1992_v28, %v683_v24  ;;  %v724_v31 = vrot.slane %v2008_v46, 1  ;;  %v845_v28 = vld [vmem:[#allocation5 + $0x130] sm:$0xff]  ;;  %940 = vmatpush.msra.mxu2 %v846_v15  ;;  %960 = vmatpush.msra.mxu3 %v862_v2  ;;  %v858_v60 = vld [vmem:[#allocation5 + $0x198] sm:$0xff]  ;;  %v808_v7 = vld [vmem:[#allocation5 + $0x8] sm:$0xff] }
 0x10e   :  { %v758_v23 = vadd.f32 %v1996_v19, %v684_v16  ;;  %v771_v6 = vadd.f32 %v770_v4, %v685_v51  ;;  %v784_v61 = vadd.f32 %v783_v29, %v686_v32  ;;  %v861_v19 = vld [vmem:[#allocation5 + $0x1b0] sm:$0xff]  ;;  %901 = vmatpush.msra.mxu0 %v813_v54  ;;  %921 = vmatpush.msra.mxu1 %v829_v58  ;;  %v856_v32 = vld [vmem:[#allocation5 + $0x188] sm:$0xff]  ;;  %v807_v11 = vld [vmem:[#allocation5] sm:$0xff] }
 0x10f   :  { %v699_v33 = vadd.f32 %v698_v13, %v697_v62  ;;  %v712_v12 = vadd.f32 %v711_v30, %v710_v48  ;;  %v746_v47 = vrot.slane %v745_v35, 4  ;;  %941 = vmatpush.msra.mxu2 %v845_v28  ;;  %961 = vmatpush.msra.mxu3 %v861_v19  ;;  %v725_v34 = vadd.f32 %v724_v31, %v2008_v46  ;;  %v809_v48 = vld [vmem:[#allocation5 + $0x10] sm:$0xff]  ;;  %v855_v54 = vld [vmem:[#allocation5 + $0x180] sm:$0xff] }
 0x110   :  { %v759_v55 = vrot.slane %v758_v23, 4  ;;  %v772_v22 = vrot.slane %v771_v6, 4  ;;  %v785_v20 = vrot.slane %v784_v61, 4  ;;  %902 = vmatpush.msra.mxu0 %v812_v49  ;;  %922 = vmatpush.msra.mxu1 %v828_v5  ;;  %v736_v62 = vadd.f32 %v735_v53, %v2013_v40  ;;  %v825_v46 = vld [vmem:[#allocation5 + $0x90] sm:$0xff]  ;;  %v840_v40 = vld [vmem:[#allocation5 + $0x108] sm:$0xff] }
 0x111   :  { %v2018_v57 = vmul.f32 0.015625, %v699_v33  ;;  %v2020_v59 = vmul.f32 0.015625, %v712_v12  ;;  %v747_v18 = vadd.f32 %v746_v47, %v745_v35  ;;  %942 = vmatpush.msra.mxu2 %v844_v36  ;;  %962 = vmatpush.msra.mxu3 %v860_v52  ;;  %v2032_v9 = vmul.f32 0.015625, %v725_v34  ;;  %v841_v16 = vld [vmem:[#allocation5 + $0x110] sm:$0xff]  ;;  %v823_v35 = vld [vmem:[#allocation5 + $0x80] sm:$0xff] }
 0x112   :  { %v760_v50 = vadd.f32 %v759_v55, %v758_v23  ;;  %v773_v17 = vadd.f32 %v772_v22, %v771_v6  ;;  %v786_v42 = vadd.f32 %v785_v20, %v784_v61  ;;  %903 = vmatpush.msra.mxu0 %v811_v27  ;;  %923 = vmatpush.msra.mxu1 %v827_v10  ;;  %v857_v51 = vld [vmem:[#allocation5 + $0x190] sm:$0xff]  ;;  %v737_v6 = vrot.slane %v736_v62, 1  ;;  %v839_v61 = vld [vmem:[#allocation5 + $0x100] sm:$0xff] }
 0x113   :  { %v748_v4 = vrot.slane %v747_v18, 2  ;;  %v2025_v63 = vand.u32 2147483647, %v2018_v57  ;;  %v2028_v0 = vand.u32 2147483647, %v2020_v59  ;;  %943 = vmatpush.msra.mxu2 %v843_v43  ;;  %963 = vmatpush.msra.mxu3 %v859_v44  ;;  %vm1009_vm2 = vcmp.lt.f32.partialorder %v2018_v57, 0.0 }
 0x114   :  { %v761_v26 = vrot.slane %v760_v50, 2  ;;  %v774_v3 = vrot.slane %v773_v17, 2  ;;  %v787_v21 = vrot.slane %v786_v42, 2  ;;  %904 = vmatpush.msra.mxu0 %v810_v56  ;;  %924 = vmatpush.msra.mxu1 %v826_v41  ;;  %v2036_v23 = vand.u32 2147483647, %v2032_v9 }
 0x115   :  { %v749_v1 = vadd.f32 %v748_v4, %v747_v18  ;;  %1240 = vlog2.f32 %v2025_v63  ;;  %944 = vmatpush.msra.mxu2 %v842_v25  ;;  %964 = vmatpush.msra.mxu3 %v858_v60  ;;  %v738_v19 = vadd.f32 %v737_v6, %v736_v62  ;;  %vm1024_vm0 = vweird.f32 %v2025_v63 }
 0x116   :  { %v762_v45 = vadd.f32 %v761_v26, %v760_v50  ;;  %v775_v37 = vadd.f32 %v774_v3, %v773_v17  ;;  %v788_v24 = vadd.f32 %v787_v21, %v786_v42  ;;  %1242 = vlog2.f32 %v2028_v0  ;;  %905 = vmatpush.msra.mxu0 %v809_v48  ;;  %925 = vmatpush.msra.mxu1 %v825_v46 }
 0x117   :  { %v750_v8 = vrot.slane %v749_v1, 1  ;;  %945 = vmatpush.msra.mxu2 %v841_v16  ;;  %965 = vmatpush.msra.mxu3 %v857_v51  ;;  %1244 = vlog2.f32 %v2036_v23  ;;  %v2058_v17 = vmul.f32 0.015625, %v738_v19  ;;  %v1027_v48 = vand.u32 2147483648, %v2018_v57 }
 0x118   :  { %v763_v14 = vrot.slane %v762_v45, 1  ;;  %v776_v29 = vrot.slane %v775_v37, 1  ;;  %v789_v15 = vrot.slane %v788_v24, 1  ;;  %906 = vmatpush.msra.mxu0 %v808_v7  ;;  %926 = vmatpush.msra.mxu1 %v824_v38  ;;  %vm1026_vm1 = vcmp.eq.f32.partialorder %v2025_v63, 0.0 }
 0x119   :  { %v751_v13 = vadd.f32 %v750_v8, %v749_v1  ;;  %946 = vmatpush.msra.mxu2 %v840_v40  ;;  %966 = vmatpush.msra.mxu3 %v856_v32  ;;  %v2062_v42 = vand.u32 2147483647, %v2058_v17  ;;  %vm1048_vm3 = vweird.f32 %v2028_v0  ;;  %vm1050_vm4 = vcmp.eq.f32.partialorder %v2028_v0, 0.0 }
 0x11a   :  { %v764_v30 = vadd.f32 %v763_v14, %v762_v45  ;;  %v777_v39 = vadd.f32 %v776_v29, %v775_v37  ;;  %907 = vmatpush.msra.mxu0 %v807_v11  ;;  %927 = vmatpush.msra.mxu1 %v823_v35  ;;  %v790_v28 = vadd.f32 %v789_v15, %v788_v24  ;;  %vm1008_vm5 = vcmp.eq.f32.partialorder %v2018_v57, 0.0 }
 0x11b   :  { %v2038_v2 = vmul.f32 0.015625, %v751_v13  ;;  %v1241_v58 = vpop.eup %1240  ;;  %947 = vmatpush.msra.mxu2 %v839_v61  ;;  %967 = vmatpush.msra.mxu3 %v855_v54  ;;  %vm1072_vm6 = vweird.f32 %v2036_v23  ;;  %v1075_v54 = vand.u32 2147483648, %v2032_v9  ;;  %vm1033_vm7 = vcmp.lt.f32.partialorder %v2020_v59, 0.0 }
 0x11c   :  { %v2040_v31 = vmul.f32 0.015625, %v764_v30  ;;  %v1014_v33 = vmul.f32 -0.33333334, %v1241_v58  ;;  %v1243_v47 = vpop.eup %1242  ;;  %v2046_v55 = vmul.f32 0.015625, %v777_v39  ;;  %v2056_v18 = vmul.f32 0.015625, %v790_v28 }
 0x11d   :  { %v2044_v12 = vand.u32 2147483647, %v2038_v2  ;;  %v1038_v20 = vmul.f32 -0.33333334, %v1243_v47  ;;  %v1245_v49 = vpop.eup %1244  ;;  %v1051_v30 = vand.u32 2147483648, %v2020_v59  ;;  %v1123_v19 = vand.u32 2147483648, %v2038_v2 }
 0x11e   :  { %v2049_v22 = vand.u32 2147483647, %v2040_v31  ;;  %1246 = vpow2.f32 %v1014_v33  ;;  %v2054_v5 = vand.u32 2147483647, %v2046_v55  ;;  %v1062_v50 = vmul.f32 -0.33333334, %v1245_v49 }
 0x11f   :  { %1248 = vlog2.f32 %v2044_v12  ;;  %v2065_v43 = vand.u32 2147483647, %v2056_v18  ;;  %vm1011_vm8 = vcmp.eq.f32.partialorder %v2025_v63, inf  ;;  %vm1120_vm9 = vweird.f32 %v2044_v12 }
 0x120   :  { %1250 = vlog2.f32 %v2049_v22  ;;  %vm1032_vm10 = vcmp.eq.f32.partialorder %v2020_v59, 0.0  ;;  %vm1122_vm11 = vcmp.eq.f32.partialorder %v2044_v12, 0.0  ;;  %vm1144_vm12 = vweird.f32 %v2049_v22 }
 0x121   :  { %1252 = vpow2.f32 %v1038_v20  ;;  %vm1074_vm14 = vcmp.eq.f32.partialorder %v2036_v23, 0.0  ;;  %vm1035_vm13 = vcmp.eq.f32.partialorder %v2028_v0, inf  ;;  %vm1128_vm15 = vcmp.eq.f32.partialorder %v2040_v31, 0.0 }
 0x122   :  { %1254 = vlog2.f32 %v2054_v5 }
 0x123   :  { %1256 = vpow2.f32 %v1062_v50 }
 0x124   :  { %v1247_v36 = vpop.eup %1246  ;;  %1258 = vlog2.f32 %v2062_v42 }
 0x125   :  { %v1249_v52 = vpop.eup %1248  ;;  %v1016_v53 = vmul.f32 %v1247_v36, %v1247_v36 }
 0x126   :  { %v1251_v27 = vpop.eup %1250  ;;  %v1110_v10 = vmul.f32 -0.33333334, %v1249_v52 }
 0x127   :  { %v1253_v34 = vpop.eup %1252  ;;  %v1017_v4 = vmul.f32 %v1016_v53, %v2025_v63  ;;  %v1134_v26 = vmul.f32 -0.33333334, %v1251_v27 }
 0x128   :  { %1260 = vpow2.f32 %v1110_v10  ;;  %v1040_v3 = vmul.f32 %v1253_v34, %v1253_v34  ;;  %v1255_v44 = vpop.eup %1254 }
 0x129   :  { %v1018_v21 = vmul.f32 %v1017_v4, %v1016_v53  ;;  %1262 = vpow2.f32 %v1134_v26  ;;  %v1257_v56 = vpop.eup %1256  ;;  %v1158_v1 = vmul.f32 -0.33333334, %v1255_v44  ;;  %v1147_v26 = vand.u32 2147483648, %v2040_v31 }
 0x12a   :  { %v1041_v41 = vmul.f32 %v1040_v3, %v2028_v0  ;;  %1264 = vlog2.f32 %v2065_v43  ;;  %v1064_v37 = vmul.f32 %v1257_v56, %v1257_v56  ;;  %v1259_v60 = vpop.eup %1258 }
 0x12b   :  { %v1019_v45 = vsub.f32 %v1018_v21, %v1247_v36  ;;  %1266 = vpow2.f32 %v1158_v1  ;;  %v1086_v29 = vmul.f32 -0.33333334, %v1259_v60 }
 0x12c   :  { %v1042_v25 = vmul.f32 %v1041_v41, %v1040_v3  ;;  %v1065_v46 = vmul.f32 %v1064_v37, %v2036_v23 }
 0x12d   :  { %v1020_v62 = vmul.f32 -0.33333334, %v1019_v45  ;;  %1268 = vpow2.f32 %v1086_v29 }
 0x12e   :  { %v1261_v8 = vpop.eup %1260  ;;  %v1043_v14 = vsub.f32 %v1042_v25, %v1253_v34  ;;  %v1066_v7 = vmul.f32 %v1065_v46, %v1064_v37 }
 0x12f   :  { %v2075_v24 = vpop.eup %1262  ;;  %v1021_v16 = vadd.f32 %v1247_v36, %v1020_v62  ;;  %v1112_v51 = vmul.f32 %v1261_v8, %v1261_v8  ;;  %v1171_v62 = vand.u32 2147483648, %v2046_v55 }
 0x130   :  { %v1265_v38 = vpop.eup %1264  ;;  %v1044_v13 = vmul.f32 -0.33333334, %v1043_v14  ;;  %v1136_v40 = vmul.f32 %v2075_v24, %v2075_v24  ;;  %v1067_v11 = vsub.f32 %v1066_v7, %v1257_v56 }
 0x131   :  { %v1022_v32 = vmul.f32 %v1021_v16, %v2018_v57  ;;  %v1113_v39 = vmul.f32 %v1112_v51, %v2044_v12  ;;  %v1182_v35 = vmul.f32 -0.33333334, %v1265_v38  ;;  %v2085_v6 = vpop.eup %1266 }
 0x132   :  { %v1045_v15 = vadd.f32 %v1253_v34, %v1044_v13  ;;  %v1137_v61 = vmul.f32 %v1136_v40, %v2049_v22  ;;  %v1068_v47 = vmul.f32 -0.33333334, %v1067_v11  ;;  %v1160_v28 = vmul.f32 %v2085_v6, %v2085_v6 }
 0x133   :  { %v1023_v58 = vmul.f32 %v1022_v32, %v1021_v16  ;;  %v1114_v33 = vmul.f32 %v1113_v39, %v1112_v51  ;;  %1270 = vpow2.f32 %v1182_v35  ;;  %v2101_v27 = vpop.eup %1268 }
 0x134   :  { %v1046_v20 = vmul.f32 %v1045_v15, %v2020_v59  ;;  %v1138_v49 = vmul.f32 %v1137_v61, %v1136_v40  ;;  %v1069_v52 = vadd.f32 %v1257_v56, %v1068_v47  ;;  %v1161_v53 = vmul.f32 %v1160_v28, %v2054_v5 }
 0x135   :  { %v1025_v50 = vsel %vm1024_vm0, %v2018_v57, %v1023_v58  ;;  %v1115_v36 = vsub.f32 %v1114_v33, %v1261_v8  ;;  %v1088_v45 = vmul.f32 %v2101_v27, %v2101_v27  ;;  %vm1168_vm0 = vweird.f32 %v2054_v5 }
 0x136   :  { %v1028_v10 = vsel %vm1026_vm1, %v1027_v48, %v1025_v50  ;;  %v1047_v34 = vmul.f32 %v1046_v20, %v1045_v15  ;;  %v1139_v4 = vsub.f32 %v1138_v49, %v2075_v24  ;;  %v1070_v44 = vmul.f32 %v1069_v52, %v2032_v9 }
 0x137   :  { %v1116_v3 = vmul.f32 -0.33333334, %v1115_v36  ;;  %v1162_v21 = vmul.f32 %v1161_v53, %v1160_v28  ;;  %v1029_v56 = vsel %vm1009_vm2, nan, %v1028_v10  ;;  %vm1104_vm1 = vcmp.eq.f32.partialorder %v2038_v2, 0.0 }
 0x138   :  { %v1049_v41 = vsel %vm1048_vm3, %v2020_v59, %v1047_v34  ;;  %v1140_v1 = vmul.f32 -0.33333334, %v1139_v4  ;;  %v1071_v60 = vmul.f32 %v1070_v44, %v1069_v52  ;;  %vm1107_vm3 = vcmp.eq.f32.partialorder %v2044_v12, inf }
 0x139   :  { %v1117_v37 = vadd.f32 %v1261_v8, %v1116_v3  ;;  %v1052_v25 = vsel %vm1050_vm4, %v1051_v30, %v1049_v41  ;;  %v1271_v48 = vpop.eup %1270  ;;  %v1163_v8 = vsub.f32 %v1162_v21, %v2085_v6  ;;  %v1089_v14 = vmul.f32 %v1088_v45, %v2062_v42 }
 0x13a   :  { %v1141_v46 = vadd.f32 %v2075_v24, %v1140_v1  ;;  %v1030_v29 = vsel %vm1008_vm5, 0.0, %v1029_v56  ;;  %vm1131_vm4 = vcmp.eq.f32.partialorder %v2049_v22, inf  ;;  %vm1056_vm2 = vcmp.eq.f32.partialorder %v2032_v9, 0.0 }
 0x13b   :  { %v1118_v16 = vmul.f32 %v1117_v37, %v2038_v2  ;;  %v1073_v51 = vsel %vm1072_vm6, %v2032_v9, %v1071_v60  ;;  %v1184_v7 = vmul.f32 %v1271_v48, %v1271_v48  ;;  %v1053_v24 = vsel %vm1033_vm7, nan, %v1052_v25 }
 0x13c   :  { %v1142_v38 = vmul.f32 %v1141_v46, %v2040_v31  ;;  %v1164_v13 = vmul.f32 -0.33333334, %v1163_v8  ;;  %v1076_v30 = vsel %vm1074_vm14, %v1075_v54, %v1073_v51  ;;  %vm1153_vm5 = vcmp.lt.f32.partialorder %v2046_v55, 0.0  ;;  %v1207_v51 = vld [vmem:[%s2227_s2] ss:$0 sm:$0xff]  ;;  %s1362_s2 = smov [#allocation7]  }
 0x13d   :  { %v1119_v57 = vmul.f32 %v1118_v16, %v1117_v37  ;;  %v1090_v40 = vmul.f32 %v1089_v14, %v1088_v45  ;;  %v1185_v32 = vmul.f32 %v1184_v7, %v2065_v43  ;;  %v1031_v39 = vsel %vm1011_vm8, inf, %v1030_v29  ;;  %s995_s26 = sshll.u32 %s1362_s2, 4  ;;  %s996_s26 = int_to_ptr.vmem [resolvable:$true] %s995_s26 }
 0x13e   :  { %v1143_v11 = vmul.f32 %v1142_v38, %v1141_v46  ;;  %v1165_v35 = vadd.f32 %v2085_v6, %v1164_v13  ;;  %vm1170_vm6 = vcmp.eq.f32.partialorder %v2054_v5, 0.0  ;;  %v1054_v61 = vsel %vm1032_vm10, 0.0, %v1053_v24 }
 0x13f   :  { %v1121_v15 = vsel %vm1120_vm9, %v2038_v2, %v1119_v57  ;;  %v1091_v54 = vsub.f32 %v1090_v40, %v2101_v27  ;;  %v1186_v58 = vmul.f32 %v1185_v32, %v1184_v7  ;;  %vm2297_vm7 = vcmp.lt.f32.partialorder %v2032_v9, 0.0 }
 0x140   :  { %v1124_v63 = vsel %vm1122_vm11, %v1123_v19, %v1121_v15  ;;  %v1145_v6 = vsel %vm1144_vm12, %v2040_v31, %v1143_v11  ;;  %v1077_v33 = vsel %vm2297_vm7, nan, %v1076_v30  ;;  %v1166_v47 = vmul.f32 %v1165_v35, %v2046_v55 }
 0x141   :  { %vm2298_vm8 = vcmp.lt.f32.partialorder %v2038_v2, 0.0  ;;  %vm2299_vm9 = vcmp.eq.f32.partialorder %v2049_v22, 0.0  ;;  %v1092_v20 = vmul.f32 -0.33333334, %v1091_v54  ;;  %v1187_v49 = vsub.f32 %v1186_v58, %v1271_v48 }
 0x142   :  { %v1125_v59 = vsel %vm2298_vm8, nan, %v1124_v63  ;;  %v1148_v28 = vsel %vm2299_vm9, %v1147_v26, %v1145_v6  ;;  %v1055_v50 = vsel %vm1035_vm13, inf, %v1054_v61  ;;  %vm2300_vm10 = vcmp.lt.f32.partialorder %v2040_v31, 0.0 }
 0x143   :  { %v1126_v19 = vsel %vm1104_vm1, 0.0, %v1125_v59  ;;  %v1149_v36 = vsel %vm2300_vm10, nan, %v1148_v28  ;;  %v1167_v52 = vmul.f32 %v1166_v47, %v1165_v35  ;;  %v1093_v34 = vadd.f32 %v2101_v27, %v1092_v20 }
 0x144   :  { %v1127_v53 = vsel %vm1107_vm3, inf, %v1126_v19  ;;  %v1150_v10 = vsel %vm1128_vm15, 0.0, %v1149_v36  ;;  %v1188_v4 = vmul.f32 -0.33333334, %v1187_v49  ;;  %vm2301_vm11 = vcmask 1041409  }
 0x145   :  { %v884_v26 = vsel %vm2301_vm11, %v1127_v53, %v1031_v39  ;;  %v1151_v2 = vsel %vm1131_vm4, inf, %v1150_v10  ;;  %v1078_v0 = vsel %vm1056_vm2, 0.0, %v1077_v33  ;;  %v1169_v3 = vsel %vm1168_vm0, %v2046_v55, %v1167_v52  ;;  %vm2302_vm12 = vmmov %vm2301_vm11 }
 0x146   :  { %908 = vmatmul.f32.vlgmr.msra.gmra.mxu0 %v884_v26  ;;  %v885_v12 = vsel %vm2302_vm12, %v1151_v2, %v1055_v50  ;;  %v1172_v31 = vsel %vm1170_vm6, %v1171_v62, %v1169_v3  ;;  %v1094_v27 = vmul.f32 %v1093_v34, %v2058_v17  ;;  %v1189_v44 = vadd.f32 %v1271_v48, %v1188_v4  ;;  %vm2303_vm1 = vmmov %vm2301_vm11 }
 0x147   :  { %928 = vmatmul.f32.vlgmr.msra.gmra.mxu1 %v885_v12  ;;  %vm1059_vm13 = vcmp.eq.f32.partialorder %v2036_v23, inf  ;;  %vm1152_vm14 = vcmp.eq.f32.partialorder %v2046_v55, 0.0  ;;  %v1173_v9 = vsel %vm1153_vm5, nan, %v1172_v31  ;;  %vm1155_vm15 = vcmp.eq.f32.partialorder %v2054_v5, inf  ;;  %vm2304_vm11 = vmmov %vm2303_vm1 }
 0x148   :  { %v1174_v22 = vsel %vm1152_vm14, 0.0, %v1173_v9  ;;  %v1095_v21 = vmul.f32 %v1094_v27, %v1093_v34  ;;  %v1190_v56 = vmul.f32 %v1189_v44, %v2056_v18  ;;  %v1079_v41 = vsel %vm1059_vm13, inf, %v1078_v0 }
 0x149   :  { %v1175_v1 = vsel %vm1155_vm15, inf, %v1174_v22  ;;  %vm1096_vm0 = vweird.f32 %v2062_v42  ;;  %v1099_v45 = vand.u32 2147483648, %v2058_v17  ;;  %vm1098_vm2 = vcmp.eq.f32.partialorder %v2062_v42, 0.0 }
 0x14a   :  { %v886_v37 = vsel %vm2303_vm1, %v1175_v1, %v1079_v41  ;;  %v1097_v23 = vsel %vm1096_vm0, %v2058_v17, %v1095_v21  ;;  %v1191_v55 = vmul.f32 %v1190_v56, %v1189_v44  ;;  %vm1081_vm3 = vcmp.lt.f32.partialorder %v2058_v17, 0.0 }
 0x14b   :  { %948 = vmatmul.f32.vlgmr.msra.gmra.mxu2 %v886_v37  ;;  %v1100_v5 = vsel %vm1098_vm2, %v1099_v45, %v1097_v23  ;;  %vm1192_vm4 = vweird.f32 %v2065_v43  ;;  %v1195_v25 = vand.u32 2147483648, %v2056_v18  ;;  %vm1080_vm5 = vcmp.eq.f32.partialorder %v2058_v17, 0.0 }
 0x14c   :  { %v1101_v60 = vsel %vm1081_vm3, nan, %v1100_v5  ;;  %v1193_v62 = vsel %vm1192_vm4, %v2056_v18, %v1191_v55  ;;  %vm1194_vm6 = vcmp.eq.f32.partialorder %v2065_v43, 0.0  ;;  %vm1177_vm7 = vcmp.lt.f32.partialorder %v2056_v18, 0.0 }
 0x14d   :  { %v1102_v48 = vsel %vm1080_vm5, 0.0, %v1101_v60  ;;  %v1196_v46 = vsel %vm1194_vm6, %v1195_v25, %v1193_v62  ;;  %vm1176_vm8 = vcmp.eq.f32.partialorder %v2056_v18, 0.0  ;;  %vm1083_vm9 = vcmp.eq.f32.partialorder %v2062_v42, inf }
 0x14e   :  { %v1197_v8 = vsel %vm1177_vm7, nan, %v1196_v46  ;;  %vm1179_vm10 = vcmp.eq.f32.partialorder %v2065_v43, inf  ;;  %v1103_v29 = vsel %vm1083_vm9, inf, %v1102_v48  ;;  %vm973_vm12 = vcmask 1041408  }
 0x14f   :  { %v1198_v14 = vsel %vm1176_vm8, 0.0, %v1197_v8 }
 0x150   :  { %v1199_v16 = vsel %vm1179_vm10, inf, %v1198_v14 }
 0x151   :  { %v887_v17 = vsel %vm2304_vm11, %v1199_v16, %v1103_v29 }
 0x152   :  { %968 = vmatmul.f32.vlgmr.msra.gmra.mxu3 %v887_v17 }
 0x1c3   :  { %v909_v7 = vpop.f32.mrf.mxu0 }
 0x1c4   :  { %v910_v24 = vadd.f32 %v1207_v51, %v909_v7  ;;  %v929_v38 = vpop.f32.mrf.mxu1 }
 0x1c6   :  { %v930_v18 = vadd.f32 %v929_v38, %v910_v24 }
 0x1ce   :  { %v949_v13 = vpop.f32.mrf.mxu2 }
 0x1cf   :  { %v950_v57 = vadd.f32 %v949_v13, %v930_v18 }
 0x1d5   :  { %v969_v30 = vpop.f32.mrf.mxu3 }
 0x1d6   :  { %v970_v42 = vadd.f32 %v969_v30, %v950_v57 }
 0x1d8   :  { %v972_v43 = vmul.f32 %v970_v42, %v970_v42 }
 0x1da   :  { %v974_v40 = vsel %vm973_vm12, %v972_v43, 0.0 }
 0x1db   :  { %975 = vadd.xlane.f32.xlu1 %v974_v40 }
 0x24e   :  { %v976_v32 = vpop.xlane.xlu1 %975 }
 0x24f   :  { %v977_v39 = vmax.f32 %v976_v32, 1e-24 }
 0x251   :  { %1272 = vrsqrt.f32 %v977_v39  ;;  %vm984_vm14 = vweird.f32 %v977_v39 }
 0x257   :  { %v1273_v11 = vpop.eup %1272 }
 0x258   :  { %v979_v35 = vmul.f32 %v1273_v11, %v977_v39  ;;  %vm985_vm13 = vweird.f32 %v1273_v11 }
 0x259   :  { %vm986_vm15 = vmor %vm984_vm14, %vm985_vm13 }
 0x25a   :  { %v980_v15 = vmul.f32 %v1273_v11, %v979_v35 }
 0x25c   :  { %v981_v61 = vmul.f32 0.5, %v980_v15 }
 0x25e   :  { %v982_v54 = vsub.f32 1.5, %v981_v61 }
 0x260   :  { %v983_v58 = vmul.f32 %v1273_v11, %v982_v54 }
 0x262   :  { %v987_v63 = vsel %vm986_vm15, %v1273_v11, %v983_v58 }
 0x263   :  { %v988_v6 = vmul.f32 %v987_v63, %v970_v42 }
 0x265   :  { %989 = vst [vmem:[#allocation7] sm:$0x3] %v988_v6 }
 0x266   :  { %1000 = dma.vmem_to_hbm [thread:$0]  %s996_s26, 32, %s998_s29, [#allocation4]  }
 0x267   :  { %1354 = dma.done.wait [#allocation4], 32  }
 0x268   :  { %1355 = vsyncadd [#allocation4], 4294967264 }
 0x269   :  { %1005 = vsyncpa [#allocation3], 1 }
 0x26a   :  { %1006 = vsyncpa [#allocation6], 1 }
 0x26b   :  { %1007 = vsyncpa [#allocation4], 1 }

</bundles_post_ra>
